<compile_context>
chip_gen: v5e
topology: v5e:2x2
jax: 0.10.0
libtpu: 0.0.40
codegen_flags: <defaults>
</compile_context>

<pallas_src>
import math
from functools import partial

import jax
import jax.numpy as jnp
from jax.experimental import pallas as pl
from jax.experimental.pallas import tpu as pltpu


def _attention_kernel(x_ref, g_ref, wqkv_ref, wo_ref, b_ref, o_ref,
                      *, heads, dim_head, scale, compute_dtype):
    bt, c, n = x_ref.shape                       # batch tile, channels, tokens (native NCL)
    hidden = heads * dim_head

    g = g_ref[...]                               # (c, 1)  f32
    bias = b_ref[...]                            # (c, 1)  f32
    wqkv = wqkv_ref[...]                         # (3*hidden, c)  compute_dtype
    wo = wo_ref[...]                             # (c, hidden)    compute_dtype

    # TODO(synk): if bt/heads grow, replace these unrolled Python loops with
    # lax.fori_loop(unroll=True) + a VMEM scratch accumulator to bound live ranges.
    for bi in range(bt):
        xb = x_ref[bi]                                               # (c, n) f32

        # --- RMSNorm over channels (sublane axis), eps matches torch F.normalize.
        ss = jnp.sum(xb * xb, axis=0, keepdims=True)                 # (1, n)
        inv = (c ** 0.5) / jnp.maximum(jnp.sqrt(ss), 1e-12)
        xn = (xb * inv * g).astype(compute_dtype)                    # (c, n)

        # --- Fused Q/K/V projection: one depth-c MXU dot for all heads & all of q,k,v.
        qkv = jax.lax.dot_general(wqkv, xn, (((1,), (0,)), ((), ())),
                                  preferred_element_type=jnp.float32)   # (3*hidden, n)

        head_out = []
        for h in range(heads):
            lo = h * dim_head
            q = qkv[lo:lo + dim_head].astype(compute_dtype)              # (d, n)
            k = qkv[hidden + lo:hidden + lo + dim_head].astype(compute_dtype)
            v = qkv[2 * hidden + lo:2 * hidden + lo + dim_head].astype(compute_dtype)

            # scores: contract over dim_head directly (no materialized transpose).
            sim = jax.lax.dot_general(q, k, (((0,), (0,)), ((), ())),
                                      preferred_element_type=jnp.float32) * scale  # (n, n)
            sim = sim - jnp.max(sim, axis=-1, keepdims=True)
            p = jnp.exp(sim)
            attn = p / jnp.sum(p, axis=-1, keepdims=True)            # exact divide (f32)

            # out_h[e, i] = sum_j attn[i, j] * v[e, j]  -> native (d, n) layout.
            out_h = jax.lax.dot_general(v, attn.astype(compute_dtype),
                                        (((1,), (1,)), ((), ())),
                                        preferred_element_type=jnp.float32)  # (d, n)
            head_out.append(out_h)

        # --- Fused output projection: one depth-hidden(=128) dot per batch.
        out_all = jnp.concatenate(head_out, axis=0).astype(compute_dtype)     # (hidden, n)
        proj = jax.lax.dot_general(wo, out_all, (((1,), (0,)), ((), ())),
                                   preferred_element_type=jnp.float32)        # (c, n)

        o_ref[bi] = (proj + bias + xb).astype(o_ref.dtype)           # bias + residual


def attention_forward(x, g, w_qkv, w_out, b_out, *, heads, dim_head,
                      compute_dtype=jnp.bfloat16, batch_tiles=1):
    """x: (b, dim, n) exactly like the PyTorch module. Returns (b, dim, n)."""
    b, c, n = x.shape
    hidden = heads * dim_head
    assert w_qkv.shape == (3 * hidden, c)
    assert w_out.shape == (c, hidden)
    assert b % batch_tiles == 0
    bt = b // batch_tiles

    # Weight/param re-layout (would happen once at parameter-load time in a real model).
    # Conv1d weights (out, in) are already contraction-ready for the native layout.
    wqkv = w_qkv.astype(compute_dtype)                    # (3*hidden, c)
    wo = w_out.astype(compute_dtype)                      # (c, hidden)
    g2 = g.reshape(c, 1).astype(jnp.float32)              # RMSNorm gain, channel column
    b2 = b_out.reshape(c, 1).astype(jnp.float32)          # output bias, channel column

    kernel = partial(_attention_kernel, heads=heads, dim_head=dim_head,
                     scale=dim_head ** (-0.5), compute_dtype=compute_dtype)

    return pl.pallas_call(
        kernel,
        out_shape=jax.ShapeDtypeStruct((b, c, n), x.dtype),
        grid_spec=pltpu.PrefetchScalarGridSpec(
            num_scalar_prefetch=0,
            grid=(batch_tiles,),
            in_specs=[
                pl.BlockSpec((bt, c, n), lambda i: (i, 0, 0)),        # x, native NCL
                pl.BlockSpec((c, 1), lambda i: (0, 0)),               # RMSNorm gain
                pl.BlockSpec((3 * hidden, c), lambda i: (0, 0)),      # fused W_qkv
                pl.BlockSpec((c, hidden), lambda i: (0, 0)),          # W_out
                pl.BlockSpec((c, 1), lambda i: (0, 0)),               # output bias
            ],
            out_specs=pl.BlockSpec((bt, c, n), lambda i: (i, 0, 0)),
        ),
        compiler_params=pltpu.CompilerParams(dimension_semantics=("parallel",)),
    )(x, g2, wqkv, wo, b2)


def _reference(x, g, w_qkv, w_out, b_out, *, heads, dim_head):
    """Pure-JAX mirror of the PyTorch forward, for correctness check."""
    b, c, n = x.shape
    hidden = heads * dim_head
    l2 = jnp.sqrt(jnp.sum(x * x, axis=1, keepdims=True))
    xn = x / jnp.maximum(l2, 1e-12) * g.reshape(1, c, 1) * (c ** 0.5)
    qkv = jnp.einsum('oc,bcn->bon', w_qkv, xn)
    q, k, v = qkv[:, :hidden], qkv[:, hidden:2 * hidden], qkv[:, 2 * hidden:]
    q = q.reshape(b, heads, dim_head, n) * dim_head ** (-0.5)
    k = k.reshape(b, heads, dim_head, n)
    v = v.reshape(b, heads, dim_head, n)
    sim = jnp.einsum('bhdq,bhdk->bhqk', q, k)
    attn = jax.nn.softmax(sim, axis=-1)
    out = jnp.einsum('bhqk,bhdk->bhqd', attn, v)          # (b, h, n, d)
    out = jnp.transpose(out, (0, 1, 3, 2)).reshape(b, hidden, n)
    return jnp.einsum('oc,bcn->bon', w_out, out) + b_out.reshape(1, c, 1) + x


if __name__ == "__main__":
    # Shapes consistent with the module defaults: dim=32, heads=4, dim_head=32.
    b, dim, n = 2, 32, 16
    heads, dim_head = 4, 32
    hidden = heads * dim_head

    key = jax.random.PRNGKey(0)
    k1, k2, k3, k4 = jax.random.split(key, 4)

    x = jax.random.normal(k1, (b, dim, n), dtype=jnp.float32)

    # Deterministic synthetic parameters (shapes from __init__):
    g = jnp.ones((dim,), jnp.float32)                                               # RMSNorm.g
    w_qkv = jax.random.normal(k2, (3 * hidden, dim), jnp.float32) / math.sqrt(dim)   # Conv1d(dim, 3*hidden, 1)
    w_out = jax.random.normal(k3, (dim, hidden), jnp.float32) / math.sqrt(hidden)    # Conv1d(hidden, dim, 1)
    b_out = jax.random.normal(k4, (dim,), jnp.float32) * 0.01                        # Conv1d bias

    y_ref = _reference(x, g, w_qkv, w_out, b_out, heads=heads, dim_head=dim_head)

    # 1) f32 MXU operands + exact softmax divide: tight semantic / layout check.
    y32 = attention_forward(x, g, w_qkv, w_out, b_out, heads=heads, dim_head=dim_head,
                            compute_dtype=jnp.float32)
    jax.block_until_ready(y32)
    assert y32.shape == (b, dim, n)
    err32 = float(jnp.max(jnp.abs(y32 - y_ref)))
    assert err32 < 5e-3, err32

    # 2) bf16 MXU operands with f32 accumulation (production default for v6e/v7x).
    #    ~0.4% relative rounding per operand through a 3-matmul chain on O(1..3)
    #    activations -> loose threshold; this check catches structural/layout bugs.
    ybf = attention_forward(x, g, w_qkv, w_out, b_out, heads=heads, dim_head=dim_head,
                            compute_dtype=jnp.bfloat16)
    jax.block_until_ready(ybf)
    assert ybf.shape == (b, dim, n)
    errbf = float(jnp.max(jnp.abs(ybf - y_ref)))
    assert errbf < 1.5e-1, errbf

    print("KERNEL_OK")
</pallas_src>

<mosaic_0001>
module attributes {stable_mosaic.version = 11 : i64} {
  func.func @_attention_kernel(%arg0: i32, %arg1: memref<2x32x16xf32, #tpu.memory_space<vmem>>, %arg2: memref<32x1xf32, #tpu.memory_space<vmem>>, %arg3: memref<384x32xf32, #tpu.memory_space<vmem>>, %arg4: memref<32x128xf32, #tpu.memory_space<vmem>>, %arg5: memref<32x1xf32, #tpu.memory_space<vmem>>, %arg6: memref<2x32x16xf32, #tpu.memory_space<vmem>>) attributes {dimension_semantics = [#tpu.dimension_semantics<parallel>], iteration_bounds = array<i64: 1>, scalar_prefetch = 0 : i64, scratch_operands = 0 : i64, tpu.core_type = #tpu.core_type<tc>, window_params = [{transform_indices = @transform_0, window_bounds = array<i64: 2, 32, 16>}, {pipeline_mode = #tpu.pipeline_mode<synchronous>, transform_indices = @transform_1, window_bounds = array<i64: 32, 1>}, {pipeline_mode = #tpu.pipeline_mode<synchronous>, transform_indices = @transform_2, window_bounds = array<i64: 384, 32>}, {pipeline_mode = #tpu.pipeline_mode<synchronous>, transform_indices = @transform_3, window_bounds = array<i64: 32, 128>}, {pipeline_mode = #tpu.pipeline_mode<synchronous>, transform_indices = @transform_4, window_bounds = array<i64: 32, 1>}, {transform_indices = @transform_5, window_bounds = array<i64: 2, 32, 16>}]} {
    %c0 = arith.constant 0 : index
    %c0_0 = arith.constant 0 : index
    %0 = vector.load %arg2[%c0, %c0_0] : memref<32x1xf32, #tpu.memory_space<vmem>>, vector<32x1xf32>
    %c0_1 = arith.constant 0 : index
    %c0_2 = arith.constant 0 : index
    %1 = vector.load %arg5[%c0_1, %c0_2] : memref<32x1xf32, #tpu.memory_space<vmem>>, vector<32x1xf32>
    %c0_3 = arith.constant 0 : index
    %c0_4 = arith.constant 0 : index
    %2 = vector.load %arg3[%c0_3, %c0_4] : memref<384x32xf32, #tpu.memory_space<vmem>>, vector<384x32xf32>
    %c0_5 = arith.constant 0 : index
    %c0_6 = arith.constant 0 : index
    %3 = vector.load %arg4[%c0_5, %c0_6] : memref<32x128xf32, #tpu.memory_space<vmem>>, vector<32x128xf32>
    %c0_7 = arith.constant 0 : index
    %c0_8 = arith.constant 0 : index
    %c0_9 = arith.constant 0 : index
    %4 = vector.load %arg1[%c0_7, %c0_8, %c0_9] : memref<2x32x16xf32, #tpu.memory_space<vmem>>, vector<1x32x16xf32>
    %5 = vector.shape_cast %4 : vector<1x32x16xf32> to vector<32x16xf32>
    %6 = arith.mulf %5, %5 : vector<32x16xf32>
    %cst = arith.constant dense<0.000000e+00> : vector<16xf32>
    %7 = vector.multi_reduction <add>, %6, %cst [0] : vector<32x16xf32> to vector<16xf32>
    %8 = vector.shape_cast %7 : vector<16xf32> to vector<1x16xf32>
    %9 = math.sqrt %8 : vector<1x16xf32>
    %cst_10 = arith.constant 9.99999996E-13 : f32
    %10 = vector.broadcast %cst_10 : f32 to vector<1x16xf32>
    %11 = arith.maximumf %9, %10 : vector<1x16xf32>
    %cst_11 = arith.constant 5.65685415 : f32
    %12 = vector.broadcast %cst_11 : f32 to vector<1x16xf32>
    %13 = arith.divf %12, %11 : vector<1x16xf32>
    %14 = vector.broadcast %13 : vector<1x16xf32> to vector<32x16xf32>
    %15 = arith.mulf %5, %14 : vector<32x16xf32>
    %16 = vector.broadcast %0 : vector<32x1xf32> to vector<32x16xf32>
    %17 = arith.mulf %15, %16 : vector<32x16xf32>
    %cst_12 = arith.constant dense<0.000000e+00> : vector<384x16xf32>
    %18 = tpu.matmul %2, %17, %cst_12 {dimension_numbers = #tpu.dot_dimension_numbers<[1], [0], [0], [1], [0, 0, 1, 1], [], []>} : vector<384x32xf32>, vector<32x16xf32>, vector<384x16xf32> -> vector<384x16xf32>
    %19 = vector.extract_strided_slice %18 {offsets = [0, 0], sizes = [32, 16], strides = [1, 1]} : vector<384x16xf32> to vector<32x16xf32>
    %20 = vector.extract_strided_slice %18 {offsets = [128, 0], sizes = [32, 16], strides = [1, 1]} : vector<384x16xf32> to vector<32x16xf32>
    %21 = vector.extract_strided_slice %18 {offsets = [256, 0], sizes = [32, 16], strides = [1, 1]} : vector<384x16xf32> to vector<32x16xf32>
    %cst_13 = arith.constant dense<0.000000e+00> : vector<16x16xf32>
    %22 = tpu.matmul %19, %20, %cst_13 {dimension_numbers = #tpu.dot_dimension_numbers<[0], [0], [1], [1], [0, 1, 1, 1], [], []>} : vector<32x16xf32>, vector<32x16xf32>, vector<16x16xf32> -> vector<16x16xf32>
    %cst_14 = arith.constant 0.176776692 : f32
    %23 = vector.broadcast %cst_14 : f32 to vector<16x16xf32>
    %24 = arith.mulf %22, %23 : vector<16x16xf32>
    %cst_15 = arith.constant dense<0xFF800000> : vector<16xf32>
    %25 = vector.multi_reduction <maximumf>, %24, %cst_15 [1] : vector<16x16xf32> to vector<16xf32>
    %26 = vector.shape_cast %25 : vector<16xf32> to vector<16x1xf32>
    %27 = vector.broadcast %26 : vector<16x1xf32> to vector<16x16xf32>
    %28 = arith.subf %24, %27 : vector<16x16xf32>
    %29 = math.exp %28 : vector<16x16xf32>
    %cst_16 = arith.constant dense<0.000000e+00> : vector<16xf32>
    %30 = vector.multi_reduction <add>, %29, %cst_16 [1] : vector<16x16xf32> to vector<16xf32>
    %31 = vector.shape_cast %30 : vector<16xf32> to vector<16x1xf32>
    %32 = vector.broadcast %31 : vector<16x1xf32> to vector<16x16xf32>
    %33 = arith.divf %29, %32 : vector<16x16xf32>
    %cst_17 = arith.constant dense<0.000000e+00> : vector<32x16xf32>
    %34 = tpu.matmul %21, %33, %cst_17 {dimension_numbers = #tpu.dot_dimension_numbers<[1], [1], [0], [0], [0, 0, 1, 0], [], []>} : vector<32x16xf32>, vector<16x16xf32>, vector<32x16xf32> -> vector<32x16xf32>
    %35 = vector.extract_strided_slice %18 {offsets = [32, 0], sizes = [32, 16], strides = [1, 1]} : vector<384x16xf32> to vector<32x16xf32>
    %36 = vector.extract_strided_slice %18 {offsets = [160, 0], sizes = [32, 16], strides = [1, 1]} : vector<384x16xf32> to vector<32x16xf32>
    %37 = vector.extract_strided_slice %18 {offsets = [288, 0], sizes = [32, 16], strides = [1, 1]} : vector<384x16xf32> to vector<32x16xf32>
    %cst_18 = arith.constant dense<0.000000e+00> : vector<16x16xf32>
    %38 = tpu.matmul %35, %36, %cst_18 {dimension_numbers = #tpu.dot_dimension_numbers<[0], [0], [1], [1], [0, 1, 1, 1], [], []>} : vector<32x16xf32>, vector<32x16xf32>, vector<16x16xf32> -> vector<16x16xf32>
    %cst_19 = arith.constant 0.176776692 : f32
    %39 = vector.broadcast %cst_19 : f32 to vector<16x16xf32>
    %40 = arith.mulf %38, %39 : vector<16x16xf32>
    %cst_20 = arith.constant dense<0xFF800000> : vector<16xf32>
    %41 = vector.multi_reduction <maximumf>, %40, %cst_20 [1] : vector<16x16xf32> to vector<16xf32>
    %42 = vector.shape_cast %41 : vector<16xf32> to vector<16x1xf32>
    %43 = vector.broadcast %42 : vector<16x1xf32> to vector<16x16xf32>
    %44 = arith.subf %40, %43 : vector<16x16xf32>
    %45 = math.exp %44 : vector<16x16xf32>
    %cst_21 = arith.constant dense<0.000000e+00> : vector<16xf32>
    %46 = vector.multi_reduction <add>, %45, %cst_21 [1] : vector<16x16xf32> to vector<16xf32>
    %47 = vector.shape_cast %46 : vector<16xf32> to vector<16x1xf32>
    %48 = vector.broadcast %47 : vector<16x1xf32> to vector<16x16xf32>
    %49 = arith.divf %45, %48 : vector<16x16xf32>
    %cst_22 = arith.constant dense<0.000000e+00> : vector<32x16xf32>
    %50 = tpu.matmul %37, %49, %cst_22 {dimension_numbers = #tpu.dot_dimension_numbers<[1], [1], [0], [0], [0, 0, 1, 0], [], []>} : vector<32x16xf32>, vector<16x16xf32>, vector<32x16xf32> -> vector<32x16xf32>
    %51 = vector.extract_strided_slice %18 {offsets = [64, 0], sizes = [32, 16], strides = [1, 1]} : vector<384x16xf32> to vector<32x16xf32>
    %52 = vector.extract_strided_slice %18 {offsets = [192, 0], sizes = [32, 16], strides = [1, 1]} : vector<384x16xf32> to vector<32x16xf32>
    %53 = vector.extract_strided_slice %18 {offsets = [320, 0], sizes = [32, 16], strides = [1, 1]} : vector<384x16xf32> to vector<32x16xf32>
    %cst_23 = arith.constant dense<0.000000e+00> : vector<16x16xf32>
    %54 = tpu.matmul %51, %52, %cst_23 {dimension_numbers = #tpu.dot_dimension_numbers<[0], [0], [1], [1], [0, 1, 1, 1], [], []>} : vector<32x16xf32>, vector<32x16xf32>, vector<16x16xf32> -> vector<16x16xf32>
    %cst_24 = arith.constant 0.176776692 : f32
    %55 = vector.broadcast %cst_24 : f32 to vector<16x16xf32>
    %56 = arith.mulf %54, %55 : vector<16x16xf32>
    %cst_25 = arith.constant dense<0xFF800000> : vector<16xf32>
    %57 = vector.multi_reduction <maximumf>, %56, %cst_25 [1] : vector<16x16xf32> to vector<16xf32>
    %58 = vector.shape_cast %57 : vector<16xf32> to vector<16x1xf32>
    %59 = vector.broadcast %58 : vector<16x1xf32> to vector<16x16xf32>
    %60 = arith.subf %56, %59 : vector<16x16xf32>
    %61 = math.exp %60 : vector<16x16xf32>
    %cst_26 = arith.constant dense<0.000000e+00> : vector<16xf32>
    %62 = vector.multi_reduction <add>, %61, %cst_26 [1] : vector<16x16xf32> to vector<16xf32>
    %63 = vector.shape_cast %62 : vector<16xf32> to vector<16x1xf32>
    %64 = vector.broadcast %63 : vector<16x1xf32> to vector<16x16xf32>
    %65 = arith.divf %61, %64 : vector<16x16xf32>
    %cst_27 = arith.constant dense<0.000000e+00> : vector<32x16xf32>
    %66 = tpu.matmul %53, %65, %cst_27 {dimension_numbers = #tpu.dot_dimension_numbers<[1], [1], [0], [0], [0, 0, 1, 0], [], []>} : vector<32x16xf32>, vector<16x16xf32>, vector<32x16xf32> -> vector<32x16xf32>
    %67 = vector.extract_strided_slice %18 {offsets = [96, 0], sizes = [32, 16], strides = [1, 1]} : vector<384x16xf32> to vector<32x16xf32>
    %68 = vector.extract_strided_slice %18 {offsets = [224, 0], sizes = [32, 16], strides = [1, 1]} : vector<384x16xf32> to vector<32x16xf32>
    %69 = vector.extract_strided_slice %18 {offsets = [352, 0], sizes = [32, 16], strides = [1, 1]} : vector<384x16xf32> to vector<32x16xf32>
    %cst_28 = arith.constant dense<0.000000e+00> : vector<16x16xf32>
    %70 = tpu.matmul %67, %68, %cst_28 {dimension_numbers = #tpu.dot_dimension_numbers<[0], [0], [1], [1], [0, 1, 1, 1], [], []>} : vector<32x16xf32>, vector<32x16xf32>, vector<16x16xf32> -> vector<16x16xf32>
    %cst_29 = arith.constant 0.176776692 : f32
    %71 = vector.broadcast %cst_29 : f32 to vector<16x16xf32>
    %72 = arith.mulf %70, %71 : vector<16x16xf32>
    %cst_30 = arith.constant dense<0xFF800000> : vector<16xf32>
    %73 = vector.multi_reduction <maximumf>, %72, %cst_30 [1] : vector<16x16xf32> to vector<16xf32>
    %74 = vector.shape_cast %73 : vector<16xf32> to vector<16x1xf32>
    %75 = vector.broadcast %74 : vector<16x1xf32> to vector<16x16xf32>
    %76 = arith.subf %72, %75 : vector<16x16xf32>
    %77 = math.exp %76 : vector<16x16xf32>
    %cst_31 = arith.constant dense<0.000000e+00> : vector<16xf32>
    %78 = vector.multi_reduction <add>, %77, %cst_31 [1] : vector<16x16xf32> to vector<16xf32>
    %79 = vector.shape_cast %78 : vector<16xf32> to vector<16x1xf32>
    %80 = vector.broadcast %79 : vector<16x1xf32> to vector<16x16xf32>
    %81 = arith.divf %77, %80 : vector<16x16xf32>
    %cst_32 = arith.constant dense<0.000000e+00> : vector<32x16xf32>
    %82 = tpu.matmul %69, %81, %cst_32 {dimension_numbers = #tpu.dot_dimension_numbers<[1], [1], [0], [0], [0, 0, 1, 0], [], []>} : vector<32x16xf32>, vector<16x16xf32>, vector<32x16xf32> -> vector<32x16xf32>
    %83 = tpu.concatenate %34, %50, %66, %82 in 0 : vector<32x16xf32>, vector<32x16xf32>, vector<32x16xf32>, vector<32x16xf32> -> vector<128x16xf32>
    %cst_33 = arith.constant dense<0.000000e+00> : vector<32x16xf32>
    %84 = tpu.matmul %3, %83, %cst_33 {dimension_numbers = #tpu.dot_dimension_numbers<[1], [0], [0], [1], [0, 0, 1, 1], [], []>} : vector<32x128xf32>, vector<128x16xf32>, vector<32x16xf32> -> vector<32x16xf32>
    %85 = vector.broadcast %1 : vector<32x1xf32> to vector<32x16xf32>
    %86 = arith.addf %84, %85 : vector<32x16xf32>
    %87 = arith.addf %86, %5 : vector<32x16xf32>
    %c0_34 = arith.constant 0 : index
    %c0_35 = arith.constant 0 : index
    %c0_36 = arith.constant 0 : index
    %88 = vector.load %arg6[%c0_34, %c0_35, %c0_36] : memref<2x32x16xf32, #tpu.memory_space<vmem>>, vector<1x32x16xf32>
    %89 = vector.shape_cast %88 : vector<1x32x16xf32> to vector<32x16xf32>
    %90 = vector.shape_cast %87 : vector<32x16xf32> to vector<1x32x16xf32>
    tpu.vector_store %arg6[%c0_34, %c0_35, %c0_36], %90 {strides = array<i32>} : memref<2x32x16xf32, #tpu.memory_space<vmem>>, vector<1x32x16xf32>,
    %c1 = arith.constant 1 : index
    %c0_37 = arith.constant 0 : index
    %c0_38 = arith.constant 0 : index
    %91 = vector.load %arg1[%c1, %c0_37, %c0_38] : memref<2x32x16xf32, #tpu.memory_space<vmem>>, vector<1x32x16xf32>
    %92 = vector.shape_cast %91 : vector<1x32x16xf32> to vector<32x16xf32>
    %93 = arith.mulf %92, %92 : vector<32x16xf32>
    %cst_39 = arith.constant dense<0.000000e+00> : vector<16xf32>
    %94 = vector.multi_reduction <add>, %93, %cst_39 [0] : vector<32x16xf32> to vector<16xf32>
    %95 = vector.shape_cast %94 : vector<16xf32> to vector<1x16xf32>
    %96 = math.sqrt %95 : vector<1x16xf32>
    %cst_40 = arith.constant 9.99999996E-13 : f32
    %97 = vector.broadcast %cst_40 : f32 to vector<1x16xf32>
    %98 = arith.maximumf %96, %97 : vector<1x16xf32>
    %cst_41 = arith.constant 5.65685415 : f32
    %99 = vector.broadcast %cst_41 : f32 to vector<1x16xf32>
    %100 = arith.divf %99, %98 : vector<1x16xf32>
    %101 = vector.broadcast %100 : vector<1x16xf32> to vector<32x16xf32>
    %102 = arith.mulf %92, %101 : vector<32x16xf32>
    %103 = vector.broadcast %0 : vector<32x1xf32> to vector<32x16xf32>
    %104 = arith.mulf %102, %103 : vector<32x16xf32>
    %cst_42 = arith.constant dense<0.000000e+00> : vector<384x16xf32>
    %105 = tpu.matmul %2, %104, %cst_42 {dimension_numbers = #tpu.dot_dimension_numbers<[1], [0], [0], [1], [0, 0, 1, 1], [], []>} : vector<384x32xf32>, vector<32x16xf32>, vector<384x16xf32> -> vector<384x16xf32>
    %106 = vector.extract_strided_slice %105 {offsets = [0, 0], sizes = [32, 16], strides = [1, 1]} : vector<384x16xf32> to vector<32x16xf32>
    %107 = vector.extract_strided_slice %105 {offsets = [128, 0], sizes = [32, 16], strides = [1, 1]} : vector<384x16xf32> to vector<32x16xf32>
    %108 = vector.extract_strided_slice %105 {offsets = [256, 0], sizes = [32, 16], strides = [1, 1]} : vector<384x16xf32> to vector<32x16xf32>
    %cst_43 = arith.constant dense<0.000000e+00> : vector<16x16xf32>
    %109 = tpu.matmul %106, %107, %cst_43 {dimension_numbers = #tpu.dot_dimension_numbers<[0], [0], [1], [1], [0, 1, 1, 1], [], []>} : vector<32x16xf32>, vector<32x16xf32>, vector<16x16xf32> -> vector<16x16xf32>
    %cst_44 = arith.constant 0.176776692 : f32
    %110 = vector.broadcast %cst_44 : f32 to vector<16x16xf32>
    %111 = arith.mulf %109, %110 : vector<16x16xf32>
    %cst_45 = arith.constant dense<0xFF800000> : vector<16xf32>
    %112 = vector.multi_reduction <maximumf>, %111, %cst_45 [1] : vector<16x16xf32> to vector<16xf32>
    %113 = vector.shape_cast %112 : vector<16xf32> to vector<16x1xf32>
    %114 = vector.broadcast %113 : vector<16x1xf32> to vector<16x16xf32>
    %115 = arith.subf %111, %114 : vector<16x16xf32>
    %116 = math.exp %115 : vector<16x16xf32>
    %cst_46 = arith.constant dense<0.000000e+00> : vector<16xf32>
    %117 = vector.multi_reduction <add>, %116, %cst_46 [1] : vector<16x16xf32> to vector<16xf32>
    %118 = vector.shape_cast %117 : vector<16xf32> to vector<16x1xf32>
    %119 = vector.broadcast %118 : vector<16x1xf32> to vector<16x16xf32>
    %120 = arith.divf %116, %119 : vector<16x16xf32>
    %cst_47 = arith.constant dense<0.000000e+00> : vector<32x16xf32>
    %121 = tpu.matmul %108, %120, %cst_47 {dimension_numbers = #tpu.dot_dimension_numbers<[1], [1], [0], [0], [0, 0, 1, 0], [], []>} : vector<32x16xf32>, vector<16x16xf32>, vector<32x16xf32> -> vector<32x16xf32>
    %122 = vector.extract_strided_slice %105 {offsets = [32, 0], sizes = [32, 16], strides = [1, 1]} : vector<384x16xf32> to vector<32x16xf32>
    %123 = vector.extract_strided_slice %105 {offsets = [160, 0], sizes = [32, 16], strides = [1, 1]} : vector<384x16xf32> to vector<32x16xf32>
    %124 = vector.extract_strided_slice %105 {offsets = [288, 0], sizes = [32, 16], strides = [1, 1]} : vector<384x16xf32> to vector<32x16xf32>
    %cst_48 = arith.constant dense<0.000000e+00> : vector<16x16xf32>
    %125 = tpu.matmul %122, %123, %cst_48 {dimension_numbers = #tpu.dot_dimension_numbers<[0], [0], [1], [1], [0, 1, 1, 1], [], []>} : vector<32x16xf32>, vector<32x16xf32>, vector<16x16xf32> -> vector<16x16xf32>
    %cst_49 = arith.constant 0.176776692 : f32
    %126 = vector.broadcast %cst_49 : f32 to vector<16x16xf32>
    %127 = arith.mulf %125, %126 : vector<16x16xf32>
    %cst_50 = arith.constant dense<0xFF800000> : vector<16xf32>
    %128 = vector.multi_reduction <maximumf>, %127, %cst_50 [1] : vector<16x16xf32> to vector<16xf32>
    %129 = vector.shape_cast %128 : vector<16xf32> to vector<16x1xf32>
    %130 = vector.broadcast %129 : vector<16x1xf32> to vector<16x16xf32>
    %131 = arith.subf %127, %130 : vector<16x16xf32>
    %132 = math.exp %131 : vector<16x16xf32>
    %cst_51 = arith.constant dense<0.000000e+00> : vector<16xf32>
    %133 = vector.multi_reduction <add>, %132, %cst_51 [1] : vector<16x16xf32> to vector<16xf32>
    %134 = vector.shape_cast %133 : vector<16xf32> to vector<16x1xf32>
    %135 = vector.broadcast %134 : vector<16x1xf32> to vector<16x16xf32>
    %136 = arith.divf %132, %135 : vector<16x16xf32>
    %cst_52 = arith.constant dense<0.000000e+00> : vector<32x16xf32>
    %137 = tpu.matmul %124, %136, %cst_52 {dimension_numbers = #tpu.dot_dimension_numbers<[1], [1], [0], [0], [0, 0, 1, 0], [], []>} : vector<32x16xf32>, vector<16x16xf32>, vector<32x16xf32> -> vector<32x16xf32>
    %138 = vector.extract_strided_slice %105 {offsets = [64, 0], sizes = [32, 16], strides = [1, 1]} : vector<384x16xf32> to vector<32x16xf32>
    %139 = vector.extract_strided_slice %105 {offsets = [192, 0], sizes = [32, 16], strides = [1, 1]} : vector<384x16xf32> to vector<32x16xf32>
    %140 = vector.extract_strided_slice %105 {offsets = [320, 0], sizes = [32, 16], strides = [1, 1]} : vector<384x16xf32> to vector<32x16xf32>
    %cst_53 = arith.constant dense<0.000000e+00> : vector<16x16xf32>
    %141 = tpu.matmul %138, %139, %cst_53 {dimension_numbers = #tpu.dot_dimension_numbers<[0], [0], [1], [1], [0, 1, 1, 1], [], []>} : vector<32x16xf32>, vector<32x16xf32>, vector<16x16xf32> -> vector<16x16xf32>
    %cst_54 = arith.constant 0.176776692 : f32
    %142 = vector.broadcast %cst_54 : f32 to vector<16x16xf32>
    %143 = arith.mulf %141, %142 : vector<16x16xf32>
    %cst_55 = arith.constant dense<0xFF800000> : vector<16xf32>
    %144 = vector.multi_reduction <maximumf>, %143, %cst_55 [1] : vector<16x16xf32> to vector<16xf32>
    %145 = vector.shape_cast %144 : vector<16xf32> to vector<16x1xf32>
    %146 = vector.broadcast %145 : vector<16x1xf32> to vector<16x16xf32>
    %147 = arith.subf %143, %146 : vector<16x16xf32>
    %148 = math.exp %147 : vector<16x16xf32>
    %cst_56 = arith.constant dense<0.000000e+00> : vector<16xf32>
    %149 = vector.multi_reduction <add>, %148, %cst_56 [1] : vector<16x16xf32> to vector<16xf32>
    %150 = vector.shape_cast %149 : vector<16xf32> to vector<16x1xf32>
    %151 = vector.broadcast %150 : vector<16x1xf32> to vector<16x16xf32>
    %152 = arith.divf %148, %151 : vector<16x16xf32>
    %cst_57 = arith.constant dense<0.000000e+00> : vector<32x16xf32>
    %153 = tpu.matmul %140, %152, %cst_57 {dimension_numbers = #tpu.dot_dimension_numbers<[1], [1], [0], [0], [0, 0, 1, 0], [], []>} : vector<32x16xf32>, vector<16x16xf32>, vector<32x16xf32> -> vector<32x16xf32>
    %154 = vector.extract_strided_slice %105 {offsets = [96, 0], sizes = [32, 16], strides = [1, 1]} : vector<384x16xf32> to vector<32x16xf32>
    %155 = vector.extract_strided_slice %105 {offsets = [224, 0], sizes = [32, 16], strides = [1, 1]} : vector<384x16xf32> to vector<32x16xf32>
    %156 = vector.extract_strided_slice %105 {offsets = [352, 0], sizes = [32, 16], strides = [1, 1]} : vector<384x16xf32> to vector<32x16xf32>
    %cst_58 = arith.constant dense<0.000000e+00> : vector<16x16xf32>
    %157 = tpu.matmul %154, %155, %cst_58 {dimension_numbers = #tpu.dot_dimension_numbers<[0], [0], [1], [1], [0, 1, 1, 1], [], []>} : vector<32x16xf32>, vector<32x16xf32>, vector<16x16xf32> -> vector<16x16xf32>
    %cst_59 = arith.constant 0.176776692 : f32
    %158 = vector.broadcast %cst_59 : f32 to vector<16x16xf32>
    %159 = arith.mulf %157, %158 : vector<16x16xf32>
    %cst_60 = arith.constant dense<0xFF800000> : vector<16xf32>
    %160 = vector.multi_reduction <maximumf>, %159, %cst_60 [1] : vector<16x16xf32> to vector<16xf32>
    %161 = vector.shape_cast %160 : vector<16xf32> to vector<16x1xf32>
    %162 = vector.broadcast %161 : vector<16x1xf32> to vector<16x16xf32>
    %163 = arith.subf %159, %162 : vector<16x16xf32>
    %164 = math.exp %163 : vector<16x16xf32>
    %cst_61 = arith.constant dense<0.000000e+00> : vector<16xf32>
    %165 = vector.multi_reduction <add>, %164, %cst_61 [1] : vector<16x16xf32> to vector<16xf32>
    %166 = vector.shape_cast %165 : vector<16xf32> to vector<16x1xf32>
    %167 = vector.broadcast %166 : vector<16x1xf32> to vector<16x16xf32>
    %168 = arith.divf %164, %167 : vector<16x16xf32>
    %cst_62 = arith.constant dense<0.000000e+00> : vector<32x16xf32>
    %169 = tpu.matmul %156, %168, %cst_62 {dimension_numbers = #tpu.dot_dimension_numbers<[1], [1], [0], [0], [0, 0, 1, 0], [], []>} : vector<32x16xf32>, vector<16x16xf32>, vector<32x16xf32> -> vector<32x16xf32>
    %170 = tpu.concatenate %121, %137, %153, %169 in 0 : vector<32x16xf32>, vector<32x16xf32>, vector<32x16xf32>, vector<32x16xf32> -> vector<128x16xf32>
    %cst_63 = arith.constant dense<0.000000e+00> : vector<32x16xf32>
    %171 = tpu.matmul %3, %170, %cst_63 {dimension_numbers = #tpu.dot_dimension_numbers<[1], [0], [0], [1], [0, 0, 1, 1], [], []>} : vector<32x128xf32>, vector<128x16xf32>, vector<32x16xf32> -> vector<32x16xf32>
    %172 = vector.broadcast %1 : vector<32x1xf32> to vector<32x16xf32>
    %173 = arith.addf %171, %172 : vector<32x16xf32>
    %174 = arith.addf %173, %92 : vector<32x16xf32>
    %c1_64 = arith.constant 1 : index
    %c0_65 = arith.constant 0 : index
    %c0_66 = arith.constant 0 : index
    %175 = vector.load %arg6[%c1_64, %c0_65, %c0_66] : memref<2x32x16xf32, #tpu.memory_space<vmem>>, vector<1x32x16xf32>
    %176 = vector.shape_cast %175 : vector<1x32x16xf32> to vector<32x16xf32>
    %177 = vector.shape_cast %174 : vector<32x16xf32> to vector<1x32x16xf32>
    tpu.vector_store %arg6[%c1_64, %c0_65, %c0_66], %177 {strides = array<i32>} : memref<2x32x16xf32, #tpu.memory_space<vmem>>, vector<1x32x16xf32>,
    return
  }
  func.func @transform_0(%arg0: i32) -> (i32, i32, i32) {
    %c0_i32 = arith.constant 0 : i32
    %c0_i32_0 = arith.constant 0 : i32
    %c0_i32_1 = arith.constant 0 : i32
    return %arg0, %c0_i32, %c0_i32_0 : i32, i32, i32
  }
  func.func @transform_1(%arg0: i32) -> (i32, i32) {
    %c0_i32 = arith.constant 0 : i32
    %c0_i32_0 = arith.constant 0 : i32
    %c0_i32_1 = arith.constant 0 : i32
    return %c0_i32, %c0_i32_0 : i32, i32
  }
  func.func @transform_2(%arg0: i32) -> (i32, i32) {
    %c0_i32 = arith.constant 0 : i32
    %c0_i32_0 = arith.constant 0 : i32
    %c0_i32_1 = arith.constant 0 : i32
    return %c0_i32, %c0_i32_0 : i32, i32
  }
  func.func @transform_3(%arg0: i32) -> (i32, i32) {
    %c0_i32 = arith.constant 0 : i32
    %c0_i32_0 = arith.constant 0 : i32
    %c0_i32_1 = arith.constant 0 : i32
    return %c0_i32, %c0_i32_0 : i32, i32
  }
  func.func @transform_4(%arg0: i32) -> (i32, i32) {
    %c0_i32 = arith.constant 0 : i32
    %c0_i32_0 = arith.constant 0 : i32
    %c0_i32_1 = arith.constant 0 : i32
    return %c0_i32, %c0_i32_0 : i32, i32
  }
  func.func @transform_5(%arg0: i32) -> (i32, i32, i32) {
    %c0_i32 = arith.constant 0 : i32
    %c0_i32_0 = arith.constant 0 : i32
    %c0_i32_1 = arith.constant 0 : i32
    return %arg0, %c0_i32, %c0_i32_0 : i32, i32, i32
  }
}

</mosaic_0001>

<bundles_post_ra>
// kernel: tpu_custom_call.1
= control target key start
LH: loop header
LB: loop body
LE: loop exit
PB: predicated region body
PF: predicated region fallthrough
CT: control target
= control target key end

     0   :  { %v2330_v0 = vmov 0   ;;  %vm88_vm0 = vcmask 130048   ;;  %vm158_vm7 = vcmask 261120   ;;  %s3220_s1 = inlined_call_operand.vmem [shape: f32[32,1], index: 1, kind: input, shape index: {}]   ;;  %s3221_s0 = inlined_call_operand.vmem [shape: f32[2,32,16], index: 0, kind: input, shape index: {}]   ;;  %s3222_s2 = inlined_call_operand.vmem [shape: f32[384,32], index: 2, kind: input, shape index: {}]   ;;  %s3223_s3 = inlined_call_operand.vmem [shape: f32[32,128], index: 3, kind: input, shape index: {}]   ;;  %s3224_s4 = inlined_call_operand.vmem [shape: f32[32,1], index: 4, kind: input, shape index: {}]   ;;  %s3225_s5 = inlined_call_operand.vmem [shape: f32[2,32,16], index: 5, kind: output, shape index: {}]  }
   0x1   :  { %2227 = vset.pattern.permute.xlu1 %v2330_v0  ;;  %2226 = vset.pattern.permute.xlu0 %v2330_v0  ;;  %v23_v1 = vld [vmem:[%s3220_s1 + $0x18] sm:$0xff]  ;;  %v21_v2 = vld [vmem:[%s3220_s1 + $0x8] sm:$0xff]  ;;  %v22_v3 = vld [vmem:[%s3220_s1 + $0x10] sm:$0xff] }
   0x2   :  { %151 = vperm.xlu0 %2226, %v23_v1   ;;  %141 = vperm.xlu1 %2227, %v21_v2   ;;  %v20_v4 = vld [vmem:[%s3220_s1] sm:$0xff]  ;;  %v81_v6 = vld [vmem:[%s3221_s0 + $0x8] sm:$0xff]  ;;  %v82_v8 = vld [vmem:[%s3221_s0 + $0x10] sm:$0xff] }
   0x3   :  { %v80_v5 = vld [vmem:[%s3221_s0] sm:$0xff]  ;;  %v85_v9 = vmul.f32 %v81_v6, %v81_v6  ;;  %v86_v10 = vmul.f32 %v82_v8, %v82_v8  ;;  %v83_v11 = vld [vmem:[%s3221_s0 + $0x18] sm:$0xff]  ;;  %v29_v61 = vld [vmem:[%s3222_s2 + $0x8] sm:$0xff] }
   0x4   :  { %v84_v7 = vmul.f32 %v80_v5, %v80_v5  ;;  %v87_v14 = vmul.f32 %v83_v11, %v83_v11  ;;  %v28_v60 = vld [vmem:[%s3222_s2] sm:$0xff]  ;;  %v30_v62 = vld [vmem:[%s3222_s2 + $0x10] sm:$0xff]  ;;  %v31_v63 = vld [vmem:[%s3222_s2 + $0x18] sm:$0xff] }
   0x5   :  { %v90_v13 = vsel %vm88_vm0, %v85_v9, 0.0  ;;  %v92_v16 = vsel %vm88_vm0, %v86_v10, 0.0  ;;  %v32_v0 = vld [vmem:[%s3222_s2 + $0x20] sm:$0xff]  ;;  %v33_v1 = vld [vmem:[%s3222_s2 + $0x28] sm:$0xff]  ;;  %v34_v2 = vld [vmem:[%s3222_s2 + $0x30] sm:$0xff] }
   0x6   :  { %v89_v12 = vsel %vm88_vm0, %v84_v7, 0.0  ;;  %v94_v18 = vsel %vm88_vm0, %v87_v14, 0.0  ;;  %v39_v7 = vld [vmem:[%s3222_s2 + $0x58] sm:$0xff]  ;;  %v41_v9 = vld [vmem:[%s3222_s2 + $0x68] sm:$0xff]  ;;  %v42_v10 = vld [vmem:[%s3222_s2 + $0x70] sm:$0xff] }
   0x7   :  { %v91_v15 = vadd.f32 %v90_v13, %v89_v12  ;;  %v2468_v13 = vld [vmem:[%s3222_s2 + $0x80] sm:$0xff] }
   0x9   :  { %v93_v17 = vadd.f32 %v92_v16, %v91_v15  ;;  %v2475_v15 = vld [vmem:[%s3222_s2 + $0x88] sm:$0xff] }
   0xa   :  { %146 = vperm.xlu0 %2226, %v22_v3   ;;  %136 = vperm.xlu1 %2227, %v20_v4   ;;  %v35_v3 = vld [vmem:[%s3222_s2 + $0x38] sm:$0xff]  ;;  %v36_v4 = vld [vmem:[%s3222_s2 + $0x40] sm:$0xff] }
   0xb   :  { %v95_v19 = vadd.f32 %v94_v18, %v93_v17  ;;  %v2482_v17 = vld [vmem:[%s3222_s2 + $0x90] sm:$0xff] }
   0xd   :  { %v96_v20 = vrot.slane %v95_v19, 4 }
   0xf   :  { %v97_v21 = vadd.f32 %v96_v20, %v95_v19  ;;  %v2489_v19 = vld [vmem:[%s3222_s2 + $0x98] sm:$0xff] }
  0x11   :  { %v98_v22 = vrot.slane %v97_v21, 2 }
  0x13   :  { %v99_v23 = vadd.f32 %v98_v22, %v97_v21  ;;  %v2496_v21 = vld [vmem:[%s3222_s2 + $0xa0] sm:$0xff] }
  0x15   :  { %v100_v24 = vrot.slane %v99_v23, 1 }
  0x17   :  { %v101_v25 = vadd.f32 %v100_v24, %v99_v23  ;;  %v2503_v23 = vld [vmem:[%s3222_s2 + $0xa8] sm:$0xff]  ;;  %v2510_v24 = vld [vmem:[%s3222_s2 + $0x130] sm:$0xff] }
  0x19   :  { %2228 = vrsqrt.f32 %v101_v25  ;;  %vm109_vm1 = vcmp.eq.f32.partialorder %v101_v25, inf  ;;  %v112_v33 = vand.u32 2147483648, %v101_v25  ;;  %vm111_vm2 = vcmp.eq.f32.partialorder %v101_v25, 0.0 }
  0x1f   :  { %v2229_v26 = vpop.eup %2228 }
  0x20   :  { %v103_v27 = vmul.f32 %v2229_v26, %v101_v25 }
  0x22   :  { %v104_v28 = vmul.f32 %v2229_v26, %v103_v27  ;;  %v2524_v27 = vld [vmem:[%s3222_s2 + $0x138] sm:$0xff] }
  0x24   :  { %v105_v29 = vmul.f32 0.5, %v104_v28 }
  0x26   :  { %v106_v30 = vsub.f32 1.5, %v105_v29  ;;  %v2529_v29 = vld [vmem:[%s3222_s2 + $0xb8] sm:$0xff] }
  0x28   :  { %v107_v31 = vmul.f32 %v2229_v26, %v106_v30  ;;  %v2515_v26 = vld [vmem:[%s3222_s2 + $0xb0] sm:$0xff]  ;;  %v68_v30 = vld [vmem:[%s3222_s2 + $0x140] sm:$0xff] }
  0x2a   :  { %v108_v32 = vmul.f32 %v107_v31, %v101_v25 }
  0x2c   :  { %v110_v34 = vsel %vm109_vm1, %v101_v25, %v108_v32  ;;  %v2541_v32 = vld [vmem:[%s3222_s2 + $0xc0] sm:$0xff] }
  0x2d   :  { %v113_v35 = vsel %vm111_vm2, %v112_v33, %v110_v34  ;;  %v69_v33 = vld [vmem:[%s3222_s2 + $0x148] sm:$0xff] }
  0x2e   :  { %v114_v36 = vmax.f32 %v113_v35, 1e-12  ;;  %v2552_v35 = vld [vmem:[%s3222_s2 + $0xc8] sm:$0xff] }
  0x30   :  { %2230 = vrcp.f32 %v114_v36  ;;  %vm120_vm3 = vweird.f32 %v114_v36  ;;  %v126_v41 = vand.u32 2147483648, %v114_v36  ;;  %v124_v43 = vand.u32 2147483647, %v114_v36 }
  0x32   :  { %v127_v44 = vor.u32 1.1754944e-38, %v126_v41  ;;  %vm125_vm6 = vcmp.eq.f32.partialorder %v124_v43, 8.507059e+37  ;;  %v2574_v41 = vld [vmem:[%s3222_s2 + $0xd8] sm:$0xff] }
  0x36   :  { %v2231_v37 = vpop.eup %2230 }
  0x37   :  { %v116_v38 = vmul.f32 %v2231_v37, %v114_v36  ;;  %vm121_vm4 = vweird.f32 %v2231_v37  ;;  %v70_v36 = vld [vmem:[%s3222_s2 + $0x150] sm:$0xff] }
  0x38   :  { %vm122_vm5 = vmor %vm120_vm3, %vm121_vm4 }
  0x39   :  { %v117_v39 = vsub.f32 1.0, %v116_v38  ;;  %v2563_v38 = vld [vmem:[%s3222_s2 + $0xd0] sm:$0xff] }
  0x3b   :  { %v118_v40 = vmul.f32 %v2231_v37, %v117_v39  ;;  %v71_v39 = vld [vmem:[%s3222_s2 + $0x158] sm:$0xff] }
  0x3d   :  { %v119_v42 = vadd.f32 %v2231_v37, %v118_v40 }
  0x3f   :  { %v123_v45 = vsel %vm122_vm5, %v2231_v37, %v119_v42  ;;  %v72_v42 = vld [vmem:[%s3222_s2 + $0x160] sm:$0xff] }
  0x40   :  { %v128_v46 = vsel %vm125_vm6, %v127_v44, %v123_v45  ;;  %v2585_v44 = vld [vmem:[%s3222_s2 + $0xe0] sm:$0xff]  ;;  %v73_v45 = vld [vmem:[%s3222_s2 + $0x168] sm:$0xff] }
  0x41   :  { %v129_v47 = vmul.f32 5.656854, %v128_v46 }
  0x43   :  { %v133_v48 = vmul.f32 %v129_v47, %v83_v11  ;;  %v132_v52 = vmul.f32 %v129_v47, %v82_v8  ;;  %v131_v53 = vmul.f32 %v129_v47, %v81_v6  ;;  %v130_v56 = vmul.f32 %v129_v47, %v80_v5  ;;  %v37_v5 = vld [vmem:[%s3222_s2 + $0x48] sm:$0xff]  ;;  %v38_v6 = vld [vmem:[%s3222_s2 + $0x50] sm:$0xff]  ;;  %v40_v8 = vld [vmem:[%s3222_s2 + $0x60] sm:$0xff] }
  0x44   :  { %v43_v11 = vld [vmem:[%s3222_s2 + $0x78] sm:$0xff]  ;;  %v2596_v47 = vld [vmem:[%s3222_s2 + $0xe8] sm:$0xff] }
  0x74   :  { %v2389_v49 = vpop.permute.xlu0 %151  ;;  %v2391_v50 = vpop.permute.xlu1 %141 }
  0x75   :  { %v157_v51 = vmul.f32 %v2389_v49, %v133_v48  ;;  %v155_v58 = vmul.f32 %v2391_v50, %v131_v53  ;;  %v2604_v48 = vld [vmem:[%s3222_s2 + $0x170] sm:$0xff]  ;;  %v2618_v53 = vld [vmem:[%s3222_s2 + $0x178] sm:$0xff] }
  0x77   :  { %315 = vmatpush.msra.mxu0 %v157_v51  ;;  %2214 = vmatpush.msra.mxu1 %v157_v51 }
  0x7c   :  { %v2394_v54 = vpop.permute.xlu0 %146  ;;  %v2397_v57 = vpop.permute.xlu1 %136 }
  0x7d   :  { %v156_v55 = vmul.f32 %v2394_v54, %v132_v52  ;;  %v154_v59 = vmul.f32 %v2397_v57, %v130_v56  ;;  %v2609_v52 = vld [vmem:[%s3222_s2 + $0xf0] sm:$0xff]  ;;  %v2623_v56 = vld [vmem:[%s3222_s2 + $0xf8] sm:$0xff] }
  0x7f   :  { %316 = vmatpush.msra.mxu0 %v156_v55  ;;  %2215 = vmatpush.msra.mxu1 %v156_v55 }
  0x81   :  { %317 = vmatpush.msra.mxu0 %v155_v58  ;;  %2216 = vmatpush.msra.mxu1 %v155_v58  ;;  %v2632_v58 = vld [vmem:[%s3221_s0 + $0x20] sm:$0xff] }
  0x83   :  { %318 = vmatpush.msra.mxu0 %v154_v59  ;;  %2217 = vmatpush.msra.mxu1 %v154_v59  ;;  %v2637_v59 = vld [vmem:[%s3221_s0 + $0x28] sm:$0xff] }
  0x84   :  { %2046 = vmatmul.msk.f32.vlgmr.msra.gmra.mxu0 %vm158_vm7, %v28_v60  ;;  %2084 = vmatmul.msk.f32.vlgmr.msra.gmra.mxu1 %vm158_vm7, %v2510_v24 }
  0x8c   :  { %2047 = vmatmul.msk.f32.gmra.mxu0 %vm158_vm7, %v29_v61  ;;  %2085 = vmatmul.msk.f32.gmra.mxu1 %vm158_vm7, %v2524_v27  ;;  %v1158_v61 = vmul.f32 %v2632_v58, %v2632_v58 }
  0x94   :  { %2048 = vmatmul.msk.f32.gmra.mxu0 %vm158_vm7, %v30_v62  ;;  %2086 = vmatmul.msk.f32.gmra.mxu1 %vm158_vm7, %v68_v30  ;;  %v1159_v62 = vmul.f32 %v2637_v59, %v2637_v59 }
  0x9c   :  { %2049 = vmatmul.msk.f32.gmra.mxu0 %vm158_vm7, %v31_v63  ;;  %2087 = vmatmul.msk.f32.gmra.mxu1 %vm158_vm7, %v69_v33  ;;  %v2646_v63 = vld [vmem:[%s3221_s0 + $0x30] sm:$0xff] }
  0xa4   :  { %2050 = vmatmul.msk.f32.gmra.mxu0 %vm158_vm7, %v32_v0  ;;  %2088 = vmatmul.msk.f32.gmra.mxu1 %vm158_vm7, %v70_v36  ;;  %v1160_v0 = vmul.f32 %v2646_v63, %v2646_v63 }
  0xac   :  { %2051 = vmatmul.msk.f32.gmra.mxu0 %vm158_vm7, %v33_v1  ;;  %2089 = vmatmul.msk.f32.gmra.mxu1 %vm158_vm7, %v71_v39  ;;  %v1162_v1 = vsel %vm88_vm0, %v1158_v61, 0.0 }
  0xb4   :  { %2052 = vmatmul.msk.f32.gmra.mxu0 %vm158_vm7, %v34_v2  ;;  %2090 = vmatmul.msk.f32.gmra.mxu1 %vm158_vm7, %v72_v42  ;;  %v1163_v2 = vsel %vm88_vm0, %v1159_v62, 0.0 }
  0xbc   :  { %2053 = vmatmul.msk.f32.gmra.mxu0 %vm158_vm7, %v35_v3  ;;  %2091 = vmatmul.msk.f32.gmra.mxu1 %vm158_vm7, %v73_v45  ;;  %v2655_v3 = vld [vmem:[%s3221_s0 + $0x38] sm:$0xff] }
  0xc4   :  { %2054 = vmatmul.msk.f32.gmra.mxu0 %vm158_vm7, %v36_v4  ;;  %2092 = vmatmul.msk.f32.gmra.mxu1 %vm158_vm7, %v2604_v48 }
  0xcc   :  { %2055 = vmatmul.msk.f32.gmra.mxu0 %vm158_vm7, %v37_v5  ;;  %2093 = vmatmul.msk.f32.gmra.mxu1 %vm158_vm7, %v2618_v53  ;;  %v1164_v5 = vadd.f32 %v1163_v2, %v1162_v1 }
  0xd4   :  { %2056 = vmatmul.msk.f32.gmra.mxu0 %vm158_vm7, %v38_v6  ;;  %v1161_v6 = vmul.f32 %v2655_v3, %v2655_v3 }
  0xdc   :  { %2057 = vmatmul.msk.f32.gmra.mxu0 %vm158_vm7, %v39_v7  ;;  %v1165_v7 = vsel %vm88_vm0, %v1160_v0, 0.0 }
  0xe4   :  { %2058 = vmatmul.msk.f32.gmra.mxu0 %vm158_vm7, %v40_v8  ;;  %v1166_v8 = vadd.f32 %v1165_v7, %v1164_v5 }
  0xec   :  { %2059 = vmatmul.msk.f32.gmra.mxu0 %vm158_vm7, %v41_v9  ;;  %v1167_v9 = vsel %vm88_vm0, %v1161_v6, 0.0 }
  0xf4   :  { %2060 = vmatmul.msk.f32.gmra.mxu0 %vm158_vm7, %v42_v10 }
  0xfc   :  { %2061 = vmatmul.msk.f32.gmra.mxu0 %vm158_vm7, %v43_v11  ;;  %v1168_v11 = vadd.f32 %v1167_v9, %v1166_v8 }
 0x101   :  { %v320_v12 = vpop.f32.mrf.mxu0 }
 0x102   :  { %464 = vxpose.xlu2.b32.start [1/4] (short) (narrow) %v320_v12, 16  ;;  %v1169_v12 = vrot.slane %v1168_v11, 4 }
 0x104   :  { %2062 = vmatmul.msk.f32.gmra.mxu0 %vm158_vm7, %v2468_v13 }
 0x109   :  { %v323_v14 = vpop.f32.mrf.mxu0 }
 0x10a   :  { %465 = vxpose.xlu2.b32.cont [2/4] (short) (narrow) %v323_v14, 16 }
 0x10c   :  { %2063 = vmatmul.msk.f32.gmra.mxu0 %vm158_vm7, %v2475_v15 }
 0x111   :  { %v326_v16 = vpop.f32.mrf.mxu0 }
 0x112   :  { %466 = vxpose.xlu2.b32.cont [3/4] (short) (narrow) %v326_v16, 16  ;;  %v1170_v16 = vadd.f32 %v1169_v12, %v1168_v11 }
 0x114   :  { %2064 = vmatmul.msk.f32.gmra.mxu0 %vm158_vm7, %v2482_v17 }
 0x119   :  { %v329_v18 = vpop.f32.mrf.mxu0 }
 0x11a   :  { %467 = vxpose.xlu2.b32.end [4/4] (short) (narrow) %v329_v18, 16 }
 0x11c   :  { %2065 = vmatmul.msk.f32.gmra.mxu0 %vm158_vm7, %v2489_v19 }
 0x121   :  { %v332_v20 = vpop.f32.mrf.mxu0 }
 0x122   :  { %622 = vxpose.xlu0.b32.start [1/4] (short) (narrow) %v332_v20, 16  ;;  %v1171_v20 = vrot.slane %v1170_v16, 2 }
 0x124   :  { %2066 = vmatmul.msk.f32.gmra.mxu0 %vm158_vm7, %v2496_v21 }
 0x129   :  { %v335_v22 = vpop.f32.mrf.mxu0 }
 0x12a   :  { %623 = vxpose.xlu0.b32.cont [2/4] (short) (narrow) %v335_v22, 16 }
 0x12c   :  { %2067 = vmatmul.msk.f32.gmra.mxu0 %vm158_vm7, %v2503_v23 }
 0x131   :  { %v338_v25 = vpop.f32.mrf.mxu0 }
 0x132   :  { %624 = vxpose.xlu0.b32.cont [3/4] (short) (narrow) %v338_v25, 16  ;;  %v1172_v25 = vadd.f32 %v1171_v20, %v1170_v16 }
 0x134   :  { %2068 = vmatmul.msk.f32.gmra.mxu0 %vm158_vm7, %v2515_v26 }
 0x139   :  { %v341_v28 = vpop.f32.mrf.mxu0 }
 0x13a   :  { %625 = vxpose.xlu0.b32.end [4/4] (short) (narrow) %v341_v28, 16  ;;  %v1173_v28 = vrot.slane %v1172_v25, 1 }
 0x13c   :  { %2069 = vmatmul.msk.f32.gmra.mxu0 %vm158_vm7, %v2529_v29  ;;  %v1174_v33 = vadd.f32 %v1173_v28, %v1172_v25 }
 0x13e   :  { %2232 = vrsqrt.f32 %v1174_v33  ;;  %vm1182_vm8 = vcmp.eq.f32.partialorder %v1174_v33, inf  ;;  %v1185_v0 = vand.u32 2147483648, %v1174_v33  ;;  %vm1184_vm9 = vcmp.eq.f32.partialorder %v1174_v33, 0.0 }
 0x141   :  { %v344_v31 = vpop.f32.mrf.mxu0 }
 0x142   :  { %780 = vxpose.xlu1.b32.start [1/4] (short) (narrow) %v344_v31, 16 }
 0x144   :  { %2070 = vmatmul.msk.f32.gmra.mxu0 %vm158_vm7, %v2541_v32  ;;  %v2233_v36 = vpop.eup %2232 }
 0x149   :  { %v347_v34 = vpop.f32.mrf.mxu0 }
 0x14a   :  { %781 = vxpose.xlu1.b32.cont [2/4] (short) (narrow) %v347_v34, 16 }
 0x14c   :  { %2071 = vmatmul.msk.f32.gmra.mxu0 %vm158_vm7, %v2552_v35 }
 0x151   :  { %v350_v37 = vpop.f32.mrf.mxu0 }
 0x152   :  { %782 = vxpose.xlu1.b32.cont [3/4] (short) (narrow) %v350_v37, 16  ;;  %v1176_v37 = vmul.f32 %v2233_v36, %v1174_v33 }
 0x154   :  { %2072 = vmatmul.msk.f32.gmra.mxu0 %vm158_vm7, %v2563_v38  ;;  %v1177_v42 = vmul.f32 %v2233_v36, %v1176_v37 }
 0x159   :  { %v353_v40 = vpop.f32.mrf.mxu0 }
 0x15a   :  { %783 = vxpose.xlu1.b32.end [4/4] (short) (narrow) %v353_v40, 16  ;;  %v2663_v40 = vpop.f32.mrf.mxu1 }
 0x15c   :  { %2073 = vmatmul.msk.f32.gmra.mxu0 %vm158_vm7, %v2574_v41 }
 0x161   :  { %v356_v43 = vpop.f32.mrf.mxu0 }
 0x162   :  { %938 = vxpose.xlu2.b32.start [1/4] (short) (narrow) %v356_v43, 16  ;;  %v1178_v43 = vmul.f32 0.5, %v1177_v42 }
 0x164   :  { %2074 = vmatmul.msk.f32.gmra.mxu0 %vm158_vm7, %v2585_v44 }
 0x169   :  { %v359_v46 = vpop.f32.mrf.mxu0 }
 0x16a   :  { %939 = vxpose.xlu2.b32.cont [2/4] (short) (narrow) %v359_v46, 16  ;;  %v1179_v46 = vsub.f32 1.5, %v1178_v43 }
 0x16c   :  { %2075 = vmatmul.msk.f32.gmra.mxu0 %vm158_vm7, %v2596_v47 }
 0x171   :  { %v362_v51 = vpop.f32.mrf.mxu0 }
 0x172   :  { %940 = vxpose.xlu2.b32.cont [3/4] (short) (narrow) %v362_v51, 16  ;;  %v2665_v51 = vpop.f32.mrf.mxu1 }
 0x174   :  { %2076 = vmatmul.msk.f32.gmra.mxu0 %vm158_vm7, %v2609_v52 }
 0x179   :  { %v365_v55 = vpop.f32.mrf.mxu0 }
 0x17a   :  { %941 = vxpose.xlu2.b32.end [4/4] (short) (narrow) %v365_v55, 16  ;;  %v2668_v2 = vpop.f32.mrf.mxu1 }
 0x17c   :  { %2077 = vmatmul.msk.f32.gmra.mxu0 %vm158_vm7, %v2623_v56 }
 0x181   :  { %v368_v60 = vpop.f32.mrf.mxu0 }
 0x182   :  { %v2671_v8 = vpop.f32.mrf.mxu1 }
 0x189   :  { %v371_v4 = vpop.f32.mrf.mxu0 }
 0x191   :  { %v374_v10 = vpop.f32.mrf.mxu0 }
 0x199   :  { %v377_v14 = vpop.f32.mrf.mxu0 }
 0x19a   :  { %514 = vmatpush.msrb.mxu1 %v377_v14  ;;  %v2673_v14 = vpop.f32.mrf.mxu1 }
 0x19b   :  { %v480_v18 = vpop.trf.xlu2 }
 0x19c   :  { %515 = vmatpush.msrb.mxu1 %v374_v10 }
 0x19e   :  { %516 = vmatpush.msrb.mxu1 %v371_v4 }
 0x1a0   :  { %517 = vmatpush.msrb.mxu1 %v368_v60  ;;  %v1180_v60 = vmul.f32 %v2233_v36, %v1179_v46 }
 0x1a1   :  { %v380_v22 = vpop.f32.mrf.mxu0  ;;  %2094 = vmatmul.msk.f32.vlgmr.msrb.gmra.mxu1 %vm158_vm7, %v480_v18 }
 0x1a2   :  { %v1181_v62 = vmul.f32 %v1180_v60, %v1174_v33  ;;  %v2676_v25 = vpop.f32.mrf.mxu1 }
 0x1a3   :  { %v481_v30 = vpop.trf.xlu2 }
 0x1a4   :  { %v1183_v4 = vsel %vm1182_vm8, %v1174_v33, %v1181_v62 }
 0x1a5   :  { %v1186_v6 = vsel %vm1184_vm9, %v1185_v0, %v1183_v4 }
 0x1a6   :  { %v1187_v7 = vmax.f32 %v1186_v6, 1e-12 }
 0x1a8   :  { %2234 = vrcp.f32 %v1187_v7  ;;  %vm1193_vm10 = vweird.f32 %v1187_v7  ;;  %v1199_v28 = vand.u32 2147483648, %v1187_v7 }
 0x1a9   :  { %v383_v31 = vpop.f32.mrf.mxu0  ;;  %2095 = vmatmul.msk.f32.gmra.mxu1 %vm158_vm7, %v481_v30 }
 0x1aa   :  { %v2679_v42 = vpop.f32.mrf.mxu1 }
 0x1ae   :  { %v2235_v10 = vpop.eup %2234 }
 0x1af   :  { %v1189_v12 = vmul.f32 %v2235_v10, %v1187_v7  ;;  %vm1194_vm11 = vweird.f32 %v2235_v10 }
 0x1b0   :  { %vm1195_vm12 = vmor %vm1193_vm10, %vm1194_vm11 }
 0x1b1   :  { %v386_v34 = vpop.f32.mrf.mxu0  ;;  %v1190_v16 = vsub.f32 1.0, %v1189_v12 }
 0x1b2   :  { %v2687_v0 = vpop.f32.mrf.mxu1 }
 0x1b9   :  { %v389_v39 = vpop.f32.mrf.mxu0 }
 0x1ba   :  { %672 = vmatpush.msra.mxu3 %v389_v39 }
 0x1bc   :  { %673 = vmatpush.msra.mxu3 %v386_v34  ;;  %v1200_v34 = vor.u32 1.1754944e-38, %v1199_v28  ;;  %v60_v28 = vld [vmem:[%s3222_s2 + $0x100] sm:$0xff] }
 0x1bd   :  { %2078 = vmatmul.msk.f32.gmra.mxu0 %vm158_vm7, %v60_v28 }
 0x1be   :  { %674 = vmatpush.msra.mxu3 %v383_v31  ;;  %v1197_v31 = vand.u32 2147483647, %v1187_v7 }
 0x1c0   :  { %675 = vmatpush.msra.mxu3 %v380_v22  ;;  %v1191_v22 = vmul.f32 %v2235_v10, %v1190_v16  ;;  %vm1198_vm13 = vcmp.eq.f32.partialorder %v1197_v31, 8.507059e+37 }
 0x1c1   :  { %v392_v45 = vpop.f32.mrf.mxu0 }
 0x1c2   :  { %v1192_v30 = vadd.f32 %v2235_v10, %v1191_v22 }
 0x1c4   :  { %v1196_v37 = vsel %vm1195_vm12, %v2235_v10, %v1192_v30 }
 0x1c5   :  { %v1201_v39 = vsel %vm1198_vm13, %v1200_v34, %v1196_v37  ;;  %v61_v34 = vld [vmem:[%s3222_s2 + $0x108] sm:$0xff]  ;;  %v62_v37 = vld [vmem:[%s3222_s2 + $0x110] sm:$0xff] }
 0x1c6   :  { %v638_v55 = vpop.trf.xlu0  ;;  %v1202_v43 = vmul.f32 5.656854, %v1201_v39  ;;  %2079 = vmatmul.msk.f32.gmra.mxu0 %vm158_vm7, %v61_v34  ;;  %v63_v39 = vld [vmem:[%s3222_s2 + $0x118] sm:$0xff] }
 0x1c7   :  { %2102 = vmatmul.msk.f32.vlgmr.msra.gmra.mxu3 %vm158_vm7, %v638_v55 }
 0x1c8   :  { %v1206_v46 = vmul.f32 %v2655_v3, %v1202_v43  ;;  %v1205_v60 = vmul.f32 %v2646_v63, %v1202_v43  ;;  %v1204_v62 = vmul.f32 %v2637_v59, %v1202_v43  ;;  %v1203_v3 = vmul.f32 %v2632_v58, %v1202_v43 }
 0x1c9   :  { %v395_v61 = vpop.f32.mrf.mxu0 }
 0x1ca   :  { %v2696_v63 = vmul.f32 %v1204_v62, %v2391_v50 }
 0x1ce   :  { %v639_v1 = vpop.trf.xlu0  ;;  %2080 = vmatmul.msk.f32.gmra.mxu0 %vm158_vm7, %v62_v37 }
 0x1cf   :  { %2103 = vmatmul.msk.f32.gmra.mxu3 %vm158_vm7, %v639_v1  ;;  %v2691_v1 = vmul.f32 %v1205_v60, %v2394_v54  ;;  %v2705_v54 = vpop.f32.mrf.mxu1 }
 0x1d1   :  { %v398_v5 = vpop.f32.mrf.mxu0 }
 0x1d6   :  { %2081 = vmatmul.msk.f32.gmra.mxu0 %vm158_vm7, %v63_v39 }
 0x1d7   :  { %v2709_v58 = vpop.f32.mrf.mxu1 }
 0x1d9   :  { %v401_v9 = vpop.f32.mrf.mxu0 }
 0x1da   :  { %830 = vmatpush.msrb.mxu3 %v401_v9 }
 0x1dc   :  { %831 = vmatpush.msrb.mxu3 %v398_v5 }
 0x1de   :  { %832 = vmatpush.msrb.mxu3 %v395_v61  ;;  %v2684_v61 = vmul.f32 %v1206_v46, %v2389_v49  ;;  %v2700_v49 = vmul.f32 %v1203_v3, %v2397_v57 }
 0x1e0   :  { %833 = vmatpush.msrb.mxu3 %v392_v45 }
 0x1e1   :  { %v404_v11 = vpop.f32.mrf.mxu0 }
 0x1e6   :  { %v796_v18 = vpop.trf.xlu1 }
 0x1e7   :  { %2110 = vmatmul.msk.f32.vlgmr.msrb.gmra.mxu3 %vm158_vm7, %v796_v18 }
 0x1e9   :  { %v407_v20 = vpop.f32.mrf.mxu0 }
 0x1ee   :  { %v797_v33 = vpop.trf.xlu1 }
 0x1ef   :  { %2111 = vmatmul.msk.f32.gmra.mxu3 %vm158_vm7, %v797_v33 }
 0x1f1   :  { %v410_v36 = vpop.f32.mrf.mxu0 }
 0x1f9   :  { %v413_v45 = vpop.f32.mrf.mxu0 }
 0x1fa   :  { %988 = vmatpush.msra.mxu3 %v413_v45 }
 0x1fb   :  { %v954_v55 = vpop.trf.xlu2 }
 0x1fc   :  { %989 = vmatpush.msra.mxu3 %v410_v36 }
 0x1fe   :  { %990 = vmatpush.msra.mxu3 %v407_v20 }
 0x200   :  { %991 = vmatpush.msra.mxu3 %v404_v11 }
 0x201   :  { %2118 = vmatmul.msk.f32.vlgmr.msra.gmra.mxu3 %vm158_vm7, %v954_v55  ;;  %v64_v55 = vld [vmem:[%s3222_s2 + $0x120] sm:$0xff] }
 0x202   :  { %2220 = vmatpush.msrb.mxu3 %v2684_v61  ;;  %2082 = vmatmul.msk.f32.gmra.mxu0 %vm158_vm7, %v64_v55 }
 0x203   :  { %v955_v59 = vpop.trf.xlu2 }
 0x204   :  { %2221 = vmatpush.msrb.mxu3 %v2691_v1 }
 0x206   :  { %2222 = vmatpush.msrb.mxu3 %v2696_v63 }
 0x208   :  { %2223 = vmatpush.msrb.mxu3 %v2700_v49 }
 0x209   :  { %2119 = vmatmul.msk.f32.gmra.mxu3 %vm158_vm7, %v955_v59 }
 0x211   :  { %2146 = vmatmul.msk.f32.vlgmr.msrb.gmra.mxu3 %vm158_vm7, %v2468_v13 }
 0x219   :  { %2147 = vmatmul.msk.f32.gmra.mxu3 %vm158_vm7, %v2475_v15 }
 0x21e   :  { %v519_v50 = vpop.f32.mrf.mxu1 }
 0x21f   :  { %v525_v57 = vmul.f32 0.17677669, %v519_v50 }
 0x221   :  { %v527_v4 = vsel %vm88_vm0, %v525_v57, -inf  ;;  %2148 = vmatmul.msk.f32.gmra.mxu3 %vm158_vm7, %v2482_v17 }
 0x222   :  { %528 = vmax.xlane.f32.xlu0 %v527_v4 }
 0x226   :  { %v522_v5 = vpop.f32.mrf.mxu1 }
 0x227   :  { %v526_v6 = vmul.f32 0.17677669, %v522_v5 }
 0x229   :  { %v530_v7 = vsel %vm88_vm0, %v526_v6, -inf  ;;  %2149 = vmatmul.msk.f32.gmra.mxu3 %vm158_vm7, %v2489_v19 }
 0x22a   :  { %531 = vmax.xlane.f32.xlu2 %v530_v7 }
 0x231   :  { %2150 = vmatmul.msk.f32.gmra.mxu3 %vm158_vm7, %v2496_v21 }
 0x239   :  { %2151 = vmatmul.msk.f32.gmra.mxu3 %vm158_vm7, %v2503_v23 }
 0x241   :  { %2152 = vmatmul.msk.f32.gmra.mxu3 %vm158_vm7, %v2515_v26 }
 0x249   :  { %2153 = vmatmul.msk.f32.gmra.mxu3 %vm158_vm7, %v2529_v29 }
 0x24a   :  { %v677_v13 = vpop.f32.mrf.mxu3 }
 0x24b   :  { %v683_v15 = vmul.f32 0.17677669, %v677_v13 }
 0x24d   :  { %v685_v17 = vsel %vm88_vm0, %v683_v15, -inf }
 0x24e   :  { %686 = vmax.xlane.f32.xlu2 %v685_v17 }
 0x251   :  { %2154 = vmatmul.msk.f32.gmra.mxu3 %vm158_vm7, %v2541_v32 }
 0x252   :  { %v680_v19 = vpop.f32.mrf.mxu3 }
 0x253   :  { %v684_v9 = vmul.f32 0.17677669, %v680_v19 }
 0x255   :  { %v688_v21 = vsel %vm88_vm0, %v684_v9, -inf }
 0x256   :  { %689 = vmax.xlane.f32.xlu1 %v688_v21 }
 0x259   :  { %2155 = vmatmul.msk.f32.gmra.mxu3 %vm158_vm7, %v2552_v35 }
 0x261   :  { %2156 = vmatmul.msk.f32.gmra.mxu3 %vm158_vm7, %v2563_v38 }
 0x269   :  { %2157 = vmatmul.msk.f32.gmra.mxu3 %vm158_vm7, %v2574_v41 }
 0x26a   :  { %v835_v23 = vpop.f32.mrf.mxu3 }
 0x26b   :  { %v2743_v10 = vmul.f32 0.17677669, %v835_v23 }
 0x26d   :  { %v843_v35 = vsel %vm88_vm0, %v2743_v10, -inf }
 0x271   :  { %2158 = vmatmul.msk.f32.gmra.mxu3 %vm158_vm7, %v2585_v44 }
 0x272   :  { %v838_v26 = vpop.f32.mrf.mxu3 }
 0x273   :  { %v2739_v29 = vmul.f32 0.17677669, %v838_v26 }
 0x275   :  { %v846_v32 = vsel %vm88_vm0, %v2739_v29, -inf }
 0x276   :  { %847 = vmax.xlane.f32.xlu0 %v846_v32 }
 0x279   :  { %2159 = vmatmul.msk.f32.gmra.mxu3 %vm158_vm7, %v2596_v47 }
 0x27e   :  { %844 = vmax.xlane.f32.xlu0 %v843_v35 }
 0x281   :  { %2160 = vmatmul.msk.f32.gmra.mxu3 %vm158_vm7, %v2609_v52 }
 0x284   :  { %v993_v38 = vpop.f32.mrf.mxu3 }
 0x285   :  { %v2757_v12 = vmul.f32 0.17677669, %v993_v38 }
 0x287   :  { %v1001_v47 = vsel %vm88_vm0, %v2757_v12, -inf }
 0x289   :  { %2161 = vmatmul.msk.f32.gmra.mxu3 %vm158_vm7, %v2623_v56 }
 0x28c   :  { %v996_v41 = vpop.f32.mrf.mxu3 }
 0x28d   :  { %v2753_v44 = vmul.f32 0.17677669, %v996_v41 }
 0x28f   :  { %v1004_v11 = vsel %vm88_vm0, %v2753_v44, -inf }
 0x290   :  { %1005 = vmax.xlane.f32.xlu2 %v1004_v11 }
 0x291   :  { %2162 = vmatmul.msk.f32.gmra.mxu3 %vm158_vm7, %v60_v28 }
 0x295   :  { %v529_v16 = vpop.xlane.xlu0 %528 }
 0x296   :  { %v533_v20 = vsub.f32 %v525_v57, %v529_v16  ;;  %v65_v57 = vld [vmem:[%s3222_s2 + $0x128] sm:$0xff] }
 0x297   :  { %2083 = vmatmul.msk.f32.gmra.mxu0 %vm158_vm7, %v65_v57 }
 0x298   :  { %1002 = vmax.xlane.f32.xlu2 %v1001_v47  ;;  %v535_v56 = vmul.f32 1.442695, %v533_v20 }
 0x299   :  { %2163 = vmatmul.msk.f32.gmra.mxu3 %vm158_vm7, %v61_v34 }
 0x29d   :  { %v532_v18 = vpop.xlane.xlu2 %531 }
 0x29e   :  { %v534_v52 = vsub.f32 %v526_v6, %v532_v18 }
 0x2a0   :  { %v537_v22 = vmul.f32 1.442695, %v534_v52  ;;  %v416_v52 = vpop.f32.mrf.mxu0 }
 0x2a1   :  { %2164 = vmatmul.msk.f32.gmra.mxu3 %vm158_vm7, %v62_v37 }
 0x2a2   :  { %2236 = vpow2.f32 %v537_v22 }
 0x2a3   :  { %2238 = vpow2.f32 %v535_v56 }
 0x2a8   :  { %v2766_v30 = vpop.eup %2236 }
 0x2a9   :  { %v542_v31 = vsel %vm88_vm0, %v2766_v30, 0.0  ;;  %v2770_v33 = vpop.eup %2238  ;;  %2165 = vmatmul.msk.f32.gmra.mxu3 %vm158_vm7, %v63_v39 }
 0x2aa   :  { %543 = vadd.xlane.f32.xlu1 %v542_v31  ;;  %v539_v36 = vsel %vm88_vm0, %v2770_v33, 0.0 }
 0x2b1   :  { %2166 = vmatmul.msk.f32.gmra.mxu3 %vm158_vm7, %v64_v55  ;;  %v419_v55 = vpop.f32.mrf.mxu0 }
 0x2b2   :  { %540 = vadd.xlane.f32.xlu1 %v539_v36 }
 0x2b9   :  { %2167 = vmatmul.msk.f32.gmra.mxu3 %vm158_vm7, %v65_v57 }
 0x2c1   :  { %v687_v43 = vpop.xlane.xlu2 %686  ;;  %2168 = vmatmul.msk.f32.gmra.mxu3 %vm158_vm7, %v2510_v24 }
 0x2c2   :  { %v691_v45 = vsub.f32 %v683_v15, %v687_v43 }
 0x2c4   :  { %v693_v46 = vmul.f32 1.442695, %v691_v45 }
 0x2c6   :  { %2240 = vpow2.f32 %v693_v46 }
 0x2c9   :  { %v690_v60 = vpop.xlane.xlu1 %689  ;;  %2169 = vmatmul.msk.f32.gmra.mxu3 %vm158_vm7, %v2524_v27 }
 0x2ca   :  { %v692_v62 = vsub.f32 %v684_v9, %v690_v60 }
 0x2cc   :  { %v2794_v3 = vpop.eup %2240  ;;  %v695_v59 = vmul.f32 1.442695, %v692_v62 }
 0x2cd   :  { %v697_v50 = vsel %vm88_vm0, %v2794_v3, 0.0 }
 0x2ce   :  { %2242 = vpow2.f32 %v695_v59  ;;  %698 = vadd.xlane.f32.xlu0 %v697_v50 }
 0x2d4   :  { %v2803_v4 = vpop.eup %2242 }
 0x2d5   :  { %v700_v5 = vsel %vm88_vm0, %v2803_v4, 0.0 }
 0x2d6   :  { %701 = vadd.xlane.f32.xlu2 %v700_v5 }
 0x2e9   :  { %v848_v6 = vpop.xlane.xlu0 %847 }
 0x2ea   :  { %v850_v7 = vsub.f32 %v2739_v29, %v848_v6 }
 0x2ec   :  { %v853_v13 = vmul.f32 1.442695, %v850_v7 }
 0x2ee   :  { %2244 = vpow2.f32 %v853_v13 }
 0x2f1   :  { %v845_v19 = vpop.xlane.xlu0 %844 }
 0x2f2   :  { %v849_v24 = vsub.f32 %v2743_v10, %v845_v19 }
 0x2f4   :  { %v2812_v15 = vpop.eup %2244  ;;  %v851_v27 = vmul.f32 1.442695, %v849_v24 }
 0x2f5   :  { %v858_v17 = vsel %vm88_vm0, %v2812_v15, 0.0 }
 0x2f6   :  { %859 = vadd.xlane.f32.xlu2 %v858_v17 }
 0x303   :  { %v1006_v9 = vpop.xlane.xlu2 %1005 }
 0x304   :  { %v1008_v21 = vsub.f32 %v2753_v44, %v1006_v9 }
 0x306   :  { %v1011_v23 = vmul.f32 1.442695, %v1008_v21 }
 0x308   :  { %2246 = vpow2.f32 %v1011_v23 }
 0x309   :  { %2248 = vpow2.f32 %v851_v27 }
 0x30b   :  { %v1003_v26 = vpop.xlane.xlu2 %1002 }
 0x30c   :  { %v1007_v29 = vsub.f32 %v2757_v12, %v1003_v26 }
 0x30e   :  { %v2819_v32 = vpop.eup %2246  ;;  %v1009_v35 = vmul.f32 1.442695, %v1007_v29 }
 0x30f   :  { %v1016_v38 = vsel %vm88_vm0, %v2819_v32, 0.0  ;;  %v2823_v41 = vpop.eup %2248 }
 0x310   :  { %2250 = vpow2.f32 %v1009_v35  ;;  %1017 = vadd.xlane.f32.xlu1 %v1016_v38  ;;  %v855_v10 = vsel %vm88_vm0, %v2823_v41, 0.0 }
 0x316   :  { %v2825_v44 = vpop.eup %2250 }
 0x317   :  { %v1013_v11 = vsel %vm88_vm0, %v2825_v44, 0.0 }
 0x318   :  { %856 = vadd.xlane.f32.xlu1 %v855_v10  ;;  %1014 = vadd.xlane.f32.xlu0 %v1013_v11 }
 0x31d   :  { %v544_v12 = vpop.xlane.xlu1 %543 }
 0x31e   :  { %2252 = vrcp.f32 %v544_v12  ;;  %v571_v22 = vand.u32 2147483648, %v544_v12  ;;  %v569_v28 = vand.u32 2147483647, %v544_v12  ;;  %vm565_vm15 = vweird.f32 %v544_v12 }
 0x320   :  { %v572_v36 = vor.u32 1.1754944e-38, %v571_v22  ;;  %vm570_vm2 = vcmp.eq.f32.partialorder %v569_v28, 8.507059e+37 }
 0x324   :  { %v2253_v47 = vpop.eup %2252 }
 0x325   :  { %v561_v16 = vmul.f32 %v2253_v47, %v544_v12  ;;  %v541_v18 = vpop.xlane.xlu1 %540  ;;  %vm566_vm14 = vweird.f32 %v2253_v47 }
 0x326   :  { %2254 = vrcp.f32 %v541_v18  ;;  %vm567_vm1 = vmor %vm565_vm15, %vm566_vm14  ;;  %v556_v60 = vand.u32 2147483648, %v541_v18  ;;  %v554_v59 = vand.u32 2147483647, %v541_v18  ;;  %vm550_vm4 = vweird.f32 %v541_v18 }
 0x327   :  { %v562_v20 = vsub.f32 1.0, %v561_v16 }
 0x328   :  { %v557_v57 = vor.u32 1.1754944e-38, %v556_v60  ;;  %vm555_vm6 = vcmp.eq.f32.partialorder %v554_v59, 8.507059e+37 }
 0x329   :  { %v563_v56 = vmul.f32 %v2253_v47, %v562_v20 }
 0x32b   :  { %v564_v31 = vadd.f32 %v2253_v47, %v563_v56 }
 0x32c   :  { %v2255_v34 = vpop.eup %2254 }
 0x32d   :  { %v568_v37 = vsel %vm567_vm1, %v2253_v47, %v564_v31  ;;  %v546_v39 = vmul.f32 %v2255_v34, %v541_v18  ;;  %vm551_vm3 = vweird.f32 %v2255_v34 }
 0x32e   :  { %v573_v43 = vsel %vm570_vm2, %v572_v36, %v568_v37  ;;  %vm552_vm5 = vmor %vm550_vm4, %vm551_vm3 }
 0x32f   :  { %v547_v45 = vsub.f32 1.0, %v546_v39  ;;  %v574_v46 = vmul.f32 %v2766_v30, %v573_v43  ;;  %v422_v30 = vpop.f32.mrf.mxu0 }
 0x331   :  { %v548_v62 = vmul.f32 %v2255_v34, %v547_v45  ;;  %2096 = vmatpush.xpose.msk.msra.mxu1 %vm88_vm0, %v574_v46  ;;  %2218 = vmatpush.xpose.msk.msra.mxu2 %vm88_vm0, %v574_v46 }
 0x333   :  { %v549_v50 = vadd.f32 %v2255_v34, %v548_v62 }
 0x335   :  { %v553_v5 = vsel %vm552_vm5, %v2255_v34, %v549_v50 }
 0x336   :  { %v558_v6 = vsel %vm555_vm6, %v557_v57, %v553_v5 }
 0x337   :  { %v559_v7 = vmul.f32 %v2770_v33, %v558_v6  ;;  %v425_v17 = vpop.f32.mrf.mxu0 }
 0x339   :  { %2097 = vmatpush.xpose.msk.msra.mxu1 %vm88_vm0, %v559_v7  ;;  %2219 = vmatpush.xpose.msk.msra.mxu2 %vm88_vm0, %v559_v7 }
 0x33c   :  { %2098 = vmatmul.msk.f32.vlgmr.msra.gmra.mxu1 %vm88_vm0, %v416_v52  ;;  %2100 = vmatmul.msk.f32.vlgmr.msra.gmra.mxu2 %vm88_vm0, %v422_v30 }
 0x33f   :  { %v428_v34 = vpop.f32.mrf.mxu0 }
 0x341   :  { %v699_v13 = vpop.xlane.xlu0 %698 }
 0x342   :  { %2256 = vrcp.f32 %v699_v13  ;;  %vm708_vm10 = vweird.f32 %v699_v13  ;;  %v714_v11 = vand.u32 2147483648, %v699_v13  ;;  %v712_v12 = vand.u32 2147483647, %v699_v13 }
 0x344   :  { %2099 = vmatmul.msk.f32.gmra.mxu1 %vm88_vm0, %v419_v55  ;;  %2101 = vmatmul.msk.f32.gmra.mxu2 %vm88_vm0, %v425_v17  ;;  %v715_v20 = vor.u32 1.1754944e-38, %v714_v11  ;;  %vm713_vm15 = vcmp.eq.f32.partialorder %v712_v12, 8.507059e+37 }
 0x347   :  { %v431_v37 = vpop.f32.mrf.mxu0 }
 0x348   :  { %v2257_v19 = vpop.eup %2256 }
 0x349   :  { %v704_v9 = vmul.f32 %v2257_v19, %v699_v13  ;;  %v702_v21 = vpop.xlane.xlu2 %701  ;;  %vm709_vm8 = vweird.f32 %v2257_v19 }
 0x34a   :  { %2258 = vrcp.f32 %v702_v21  ;;  %v729_v29 = vand.u32 2147483648, %v702_v21  ;;  %v727_v10 = vand.u32 2147483647, %v702_v21  ;;  %vm710_vm11 = vmor %vm708_vm10, %vm709_vm8  ;;  %vm723_vm12 = vweird.f32 %v702_v21 }
 0x34b   :  { %v705_v33 = vsub.f32 1.0, %v704_v9 }
 0x34c   :  { %v730_v16 = vor.u32 1.1754944e-38, %v729_v29  ;;  %vm728_vm14 = vcmp.eq.f32.partialorder %v727_v10, 8.507059e+37 }
 0x34d   :  { %v706_v23 = vmul.f32 %v2257_v19, %v705_v33 }
 0x34f   :  { %v707_v35 = vadd.f32 %v2257_v19, %v706_v23 }
 0x350   :  { %v2259_v24 = vpop.eup %2258 }
 0x351   :  { %v719_v27 = vmul.f32 %v2259_v24, %v702_v21  ;;  %vm724_vm9 = vweird.f32 %v2259_v24  ;;  %v711_v52 = vsel %vm710_vm11, %v2257_v19, %v707_v35 }
 0x352   :  { %vm725_vm13 = vmor %vm723_vm12, %vm724_vm9  ;;  %v716_v28 = vsel %vm713_vm15, %v715_v20, %v711_v52 }
 0x353   :  { %v720_v26 = vsub.f32 1.0, %v719_v27  ;;  %v717_v31 = vmul.f32 %v2794_v3, %v716_v28 }
 0x355   :  { %v721_v38 = vmul.f32 %v2259_v24, %v720_v26 }
 0x357   :  { %v722_v47 = vadd.f32 %v2259_v24, %v721_v38 }
 0x359   :  { %v726_v18 = vsel %vm725_vm13, %v2259_v24, %v722_v47 }
 0x35a   :  { %v731_v22 = vsel %vm728_vm14, %v730_v16, %v726_v18 }
 0x35b   :  { %v732_v56 = vmul.f32 %v2803_v4, %v731_v22 }
 0x35d   :  { %2104 = vmatpush.xpose.msk.msrb.mxu1 %vm88_vm0, %v732_v56 }
 0x361   :  { %2105 = vmatpush.xpose.msk.msrb.mxu1 %vm88_vm0, %v717_v31 }
 0x364   :  { %2106 = vmatmul.msk.f32.vlgmr.msrb.gmra.mxu1 %vm88_vm0, %v428_v34 }
 0x369   :  { %v860_v36 = vpop.xlane.xlu2 %859 }
 0x36a   :  { %2260 = vrcp.f32 %v860_v36  ;;  %v887_v46 = vand.u32 2147483648, %v860_v36  ;;  %v885_v3 = vand.u32 2147483647, %v860_v36  ;;  %vm881_vm2 = vweird.f32 %v860_v36 }
 0x36c   :  { %2107 = vmatmul.msk.f32.gmra.mxu1 %vm88_vm0, %v431_v37  ;;  %v888_v60 = vor.u32 1.1754944e-38, %v887_v46  ;;  %vm886_vm4 = vcmp.eq.f32.partialorder %v885_v3, 8.507059e+37 }
 0x370   :  { %v2261_v39 = vpop.eup %2260 }
 0x371   :  { %v877_v43 = vmul.f32 %v2261_v39, %v860_v36  ;;  %vm882_vm1 = vweird.f32 %v2261_v39 }
 0x372   :  { %vm883_vm3 = vmor %vm881_vm2, %vm882_vm1 }
 0x373   :  { %v878_v45 = vsub.f32 1.0, %v877_v43 }
 0x374   :  { %2108 = vmatmul.msk.f32.gmra.mxu1 %vm88_vm0, %v2663_v40 }
 0x375   :  { %v879_v4 = vmul.f32 %v2261_v39, %v878_v45 }
 0x377   :  { %v880_v55 = vadd.f32 %v2261_v39, %v879_v4 }
 0x379   :  { %v884_v62 = vsel %vm883_vm3, %v2261_v39, %v880_v55  ;;  %v2887_v55 = vld [vmem:[%s3223_s3 + $0x8] sm:$0xff] }
 0x37a   :  { %v889_v59 = vsel %vm886_vm4, %v888_v60, %v884_v62  ;;  %v2894_v60 = vld [vmem:[%s3223_s3 + $0x10] sm:$0xff]  ;;  %v2303_v62 = vld [vmem:[%s3222_s2 + $0x18] sm:$0xff] }
 0x37b   :  { %v890_v50 = vmul.f32 %v2812_v15, %v889_v59  ;;  %v2304_v59 = vld [vmem:[%s3222_s2 + $0x20] sm:$0xff] }
 0x37c   :  { %2109 = vmatmul.msk.f32.gmra.mxu1 %vm88_vm0, %v2665_v51 }
 0x37d   :  { %2112 = vmatpush.xpose.msk.msrb.mxu2 %vm88_vm0, %v890_v50  ;;  %v2305_v50 = vld [vmem:[%s3222_s2 + $0x28] sm:$0xff] }
 0x383   :  { %v1018_v57 = vpop.xlane.xlu1 %1017 }
 0x384   :  { %2262 = vrcp.f32 %v1018_v57  ;;  %v1045_v13 = vand.u32 2147483648, %v1018_v57  ;;  %v1043_v19 = vand.u32 2147483647, %v1018_v57  ;;  %vm1039_vm6 = vweird.f32 %v1018_v57 }
 0x386   :  { %v1046_v51 = vor.u32 1.1754944e-38, %v1045_v13  ;;  %vm1044_vm9 = vcmp.eq.f32.partialorder %v1043_v19, 8.507059e+37  ;;  %v1276_v13 = vpop.f32.mrf.mxu3  ;;  %v2313_v19 = vld [vmem:[%s3222_s2 + $0x60] sm:$0xff] }
 0x38a   :  { %v2263_v40 = vpop.eup %2262 }
 0x38b   :  { %v1035_v5 = vmul.f32 %v2263_v40, %v1018_v57  ;;  %v857_v6 = vpop.xlane.xlu1 %856  ;;  %v1015_v7 = vpop.xlane.xlu0 %1014  ;;  %vm1040_vm5 = vweird.f32 %v2263_v40  ;;  %v2306_v57 = vld [vmem:[%s3222_s2 + $0x30] sm:$0xff] }
 0x38c   :  { %2264 = vrcp.f32 %v857_v6  ;;  %vm1041_vm8 = vmor %vm1039_vm6, %vm1040_vm5  ;;  %v872_v35 = vand.u32 2147483648, %v857_v6  ;;  %v1030_v11 = vand.u32 2147483648, %v1015_v7  ;;  %v870_v12 = vand.u32 2147483647, %v857_v6 }
 0x38d   :  { %v1036_v30 = vsub.f32 1.0, %v1035_v5  ;;  %2266 = vrcp.f32 %v1015_v7  ;;  %v1028_v16 = vand.u32 2147483647, %v1015_v7  ;;  %vm866_vm12 = vweird.f32 %v857_v6  ;;  %v2308_v5 = vld [vmem:[%s3222_s2 + $0x40] sm:$0xff] }
 0x38e   :  { %v873_v52 = vor.u32 1.1754944e-38, %v872_v35  ;;  %vm1024_vm13 = vweird.f32 %v1015_v7  ;;  %v1031_v22 = vor.u32 1.1754944e-38, %v1030_v11  ;;  %vm871_vm1 = vcmp.eq.f32.partialorder %v870_v12, 8.507059e+37  ;;  %v2318_v35 = vld [vmem:[%s3222_s2 + $0x158] sm:$0xff]  ;;  %v2320_v12 = vld [vmem:[%s3222_s2 + $0x160] sm:$0xff] }
 0x38f   :  { %v1037_v17 = vmul.f32 %v2263_v40, %v1036_v30  ;;  %vm1029_vm2 = vcmp.eq.f32.partialorder %v1028_v16, 8.507059e+37  ;;  %v2311_v30 = vld [vmem:[%s3222_s2 + $0x58] sm:$0xff] }
 0x391   :  { %v1038_v9 = vadd.f32 %v2263_v40, %v1037_v17  ;;  %v2312_v17 = vld [vmem:[%s3222_s2 + $0x140] sm:$0xff] }
 0x392   :  { %v2265_v15 = vpop.eup %2264  ;;  %2170 = vmatmul.msk.f32.gmra.mxu3 %vm158_vm7, %v2312_v17 }
 0x393   :  { %v2267_v21 = vpop.eup %2266  ;;  %v1042_v33 = vsel %vm1041_vm8, %v2263_v40, %v1038_v9  ;;  %v862_v24 = vmul.f32 %v2265_v15, %v857_v6  ;;  %vm867_vm10 = vweird.f32 %v2265_v15  ;;  %v2307_v40 = vld [vmem:[%s3222_s2 + $0x38] sm:$0xff]  ;;  %v2309_v6 = vld [vmem:[%s3222_s2 + $0x48] sm:$0xff] }
 0x394   :  { %v1047_v23 = vsel %vm1044_vm9, %v1046_v51, %v1042_v33  ;;  %v1020_v27 = vmul.f32 %v2267_v21, %v1015_v7  ;;  %vm1025_vm11 = vweird.f32 %v2267_v21  ;;  %vm868_vm14 = vmor %vm866_vm12, %vm867_vm10  ;;  %v2310_v7 = vld [vmem:[%s3222_s2 + $0x50] sm:$0xff]  ;;  %v2314_v51 = vld [vmem:[%s3222_s2 + $0x148] sm:$0xff] }
 0x395   :  { %v863_v26 = vsub.f32 1.0, %v862_v24  ;;  %v1048_v29 = vmul.f32 %v2819_v32, %v1047_v23  ;;  %vm1026_vm15 = vmor %vm1024_vm13, %vm1025_vm11  ;;  %v2316_v23 = vld [vmem:[%s3222_s2 + $0x150] sm:$0xff] }
 0x396   :  { %v1021_v38 = vsub.f32 1.0, %v1020_v27  ;;  %v2317_v27 = vld [vmem:[%s3222_s2 + $0x70] sm:$0xff] }
 0x397   :  { %v864_v10 = vmul.f32 %v2265_v15, %v863_v26  ;;  %2120 = vmatpush.xpose.msk.msra.mxu1 %vm88_vm0, %v1048_v29 }
 0x398   :  { %v1022_v47 = vmul.f32 %v2267_v21, %v1021_v38  ;;  %v2319_v38 = vld [vmem:[%s3222_s2 + $0x78] sm:$0xff] }
 0x399   :  { %v865_v18 = vadd.f32 %v2265_v15, %v864_v10 }
 0x39a   :  { %v1023_v20 = vadd.f32 %v2267_v21, %v1022_v47 }
 0x39b   :  { %v869_v32 = vsel %vm868_vm14, %v2265_v15, %v865_v18  ;;  %v1279_v15 = vpop.f32.mrf.mxu3  ;;  %2171 = vmatmul.msk.f32.gmra.mxu3 %vm158_vm7, %v2314_v51  ;;  %v2321_v18 = vld [vmem:[%s3222_s2 + $0x168] sm:$0xff] }
 0x39c   :  { %v874_v56 = vsel %vm871_vm1, %v873_v52, %v869_v32  ;;  %v1027_v28 = vsel %vm1026_vm15, %v2267_v21, %v1023_v20  ;;  %v2315_v21 = vld [vmem:[%s3222_s2 + $0x68] sm:$0xff] }
 0x39d   :  { %v875_v31 = vmul.f32 %v2823_v41, %v874_v56  ;;  %v1032_v34 = vsel %vm1029_vm2, %v1031_v22, %v1027_v28 }
 0x39e   :  { %v1033_v36 = vmul.f32 %v2825_v44, %v1032_v34 }
 0x39f   :  { %2113 = vmatpush.xpose.msk.msrb.mxu2 %vm88_vm0, %v875_v31 }
 0x3a0   :  { %2121 = vmatpush.xpose.msk.msra.mxu1 %vm88_vm0, %v1033_v36 }
 0x3a2   :  { %2114 = vmatmul.msk.f32.vlgmr.msrb.gmra.mxu2 %vm88_vm0, %v2668_v2 }
 0x3a3   :  { %2122 = vmatmul.msk.f32.vlgmr.msra.gmra.mxu1 %vm88_vm0, %v2679_v42  ;;  %v1282_v24 = vpop.f32.mrf.mxu3  ;;  %2172 = vmatmul.msk.f32.gmra.mxu3 %vm158_vm7, %v2316_v23 }
 0x3aa   :  { %2115 = vmatmul.msk.f32.gmra.mxu2 %vm88_vm0, %v2671_v8 }
 0x3ab   :  { %2123 = vmatmul.msk.f32.gmra.mxu1 %vm88_vm0, %v2687_v0  ;;  %v1285_v29 = vpop.f32.mrf.mxu3  ;;  %2173 = vmatmul.msk.f32.gmra.mxu3 %vm158_vm7, %v2318_v35 }
 0x3ac   :  { %1422 = vmatpush.msrb.mxu1 %v1285_v29 }
 0x3ae   :  { %1423 = vmatpush.msrb.mxu1 %v1282_v24 }
 0x3b0   :  { %1424 = vmatpush.msrb.mxu1 %v1279_v15 }
 0x3b2   :  { %2116 = vmatmul.msk.f32.gmra.mxu2 %vm88_vm0, %v2673_v14  ;;  %1425 = vmatpush.msrb.mxu1 %v1276_v13 }
 0x3b3   :  { %2124 = vmatmul.msk.f32.gmra.mxu1 %vm88_vm0, %v2705_v54  ;;  %v1288_v11 = vpop.f32.mrf.mxu3  ;;  %2174 = vmatmul.msk.f32.gmra.mxu3 %vm158_vm7, %v2320_v12 }
 0x3b9   :  { %v610_v2 = vpop.f32.mrf.mxu1 }
 0x3ba   :  { %2117 = vmatmul.msk.f32.gmra.mxu2 %vm88_vm0, %v2676_v25 }
 0x3bb   :  { %2125 = vmatmul.msk.f32.gmra.mxu1 %vm88_vm0, %v2709_v58  ;;  %v2878_v58 = vld [vmem:[%s3223_s3] sm:$0xff]  ;;  %v1291_v16 = vpop.f32.mrf.mxu3  ;;  %2175 = vmatmul.msk.f32.gmra.mxu3 %vm158_vm7, %v2321_v18 }
 0x3bf   :  { %v616_v37 = vpop.f32.mrf.mxu2 }
 0x3c1   :  { %v613_v42 = vpop.f32.mrf.mxu1 }
 0x3c3   :  { %v1294_v20 = vpop.f32.mrf.mxu3  ;;  %2176 = vmatmul.msk.f32.gmra.mxu3 %vm158_vm7, %v2604_v48 }
 0x3c7   :  { %v619_v0 = vpop.f32.mrf.mxu2 }
 0x3cb   :  { %v1297_v32 = vpop.f32.mrf.mxu3  ;;  %2177 = vmatmul.msk.f32.gmra.mxu3 %vm158_vm7, %v2618_v53 }
 0x3e1   :  { %v768_v41 = vpop.f32.mrf.mxu1 }
 0x3e9   :  { %v771_v44 = vpop.f32.mrf.mxu1 }
 0x3f1   :  { %v774_v8 = vpop.f32.mrf.mxu1 }
 0x3f9   :  { %v777_v39 = vpop.f32.mrf.mxu1 }
 0x420   :  { %v1084_v43 = vpop.f32.mrf.mxu1 }
 0x425   :  { %v926_v45 = vpop.f32.mrf.mxu2 }
 0x428   :  { %v1087_v14 = vpop.f32.mrf.mxu1 }
 0x42d   :  { %v929_v46 = vpop.f32.mrf.mxu2 }
 0x430   :  { %v1090_v4 = vpop.f32.mrf.mxu1 }
 0x435   :  { %v932_v54 = vpop.f32.mrf.mxu2 }
 0x438   :  { %v1093_v3 = vpop.f32.mrf.mxu1 }
 0x439   :  { %1116 = vmatpush.msra.mxu2 %v1093_v3 }
 0x43b   :  { %1117 = vmatpush.msra.mxu2 %v1090_v4 }
 0x43d   :  { %1118 = vmatpush.msra.mxu2 %v1087_v14  ;;  %v935_v25 = vpop.f32.mrf.mxu2 }
 0x43f   :  { %1119 = vmatpush.msra.mxu2 %v1084_v43 }
 0x441   :  { %1120 = vmatpush.msra.mxu2 %v935_v25 }
 0x443   :  { %1121 = vmatpush.msra.mxu2 %v932_v54 }
 0x445   :  { %1122 = vmatpush.msra.mxu2 %v929_v46 }
 0x447   :  { %1123 = vmatpush.msra.mxu2 %v926_v45 }
 0x449   :  { %1124 = vmatpush.msra.mxu2 %v777_v39 }
 0x44b   :  { %1125 = vmatpush.msra.mxu2 %v774_v8 }
 0x44d   :  { %1126 = vmatpush.msra.mxu2 %v771_v44 }
 0x44f   :  { %1127 = vmatpush.msra.mxu2 %v768_v41 }
 0x451   :  { %1128 = vmatpush.msra.mxu2 %v619_v0 }
 0x453   :  { %1129 = vmatpush.msra.mxu2 %v616_v37 }
 0x455   :  { %1130 = vmatpush.msra.mxu2 %v613_v42 }
 0x457   :  { %1131 = vmatpush.msra.mxu2 %v610_v2 }
 0x458   :  { %1132 = vmatmul.f32.vlgmr.msra.gmra.mxu2 %v2878_v58 }
 0x459   :  { %1223 = vmatpush.msrb.mxu2 %v2684_v61  ;;  %v2900_v61 = vld [vmem:[%s3223_s3 + $0x18] sm:$0xff] }
 0x45b   :  { %1224 = vmatpush.msrb.mxu2 %v2691_v1  ;;  %v2300_v1 = vld [vmem:[%s3222_s2] sm:$0xff] }
 0x45d   :  { %1225 = vmatpush.msrb.mxu2 %v2696_v63  ;;  %v2301_v63 = vld [vmem:[%s3222_s2 + $0x8] sm:$0xff] }
 0x45f   :  { %1226 = vmatpush.msrb.mxu2 %v2700_v49  ;;  %v2302_v49 = vld [vmem:[%s3222_s2 + $0x10] sm:$0xff] }
 0x460   :  { %1135 = vmatmul.f32.gmra.mxu2 %v2887_v55 }
 0x461   :  { %1580 = vmatpush.msra.mxu2 %v1297_v32 }
 0x463   :  { %1581 = vmatpush.msra.mxu2 %v1294_v20 }
 0x465   :  { %1582 = vmatpush.msra.mxu2 %v1291_v16 }
 0x467   :  { %1583 = vmatpush.msra.mxu2 %v1288_v11  ;;  %v3020_v11 = vpop.f32.mrf.mxu3 }
 0x468   :  { %1138 = vmatmul.f32.gmra.mxu2 %v2894_v60 }
 0x46f   :  { %v3026_v16 = vpop.f32.mrf.mxu3 }
 0x470   :  { %1141 = vmatmul.f32.gmra.mxu2 %v2900_v61 }
 0x477   :  { %v3028_v18 = vpop.f32.mrf.mxu3 }
 0x478   :  { %2130 = vmatmul.msk.f32.vlgmr.msrb.gmra.mxu2 %vm158_vm7, %v2300_v1 }
 0x480   :  { %2131 = vmatmul.msk.f32.gmra.mxu2 %vm158_vm7, %v2301_v63 }
 0x488   :  { %2132 = vmatmul.msk.f32.gmra.mxu2 %vm158_vm7, %v2302_v49 }
 0x490   :  { %2133 = vmatmul.msk.f32.gmra.mxu2 %vm158_vm7, %v2303_v62 }
 0x498   :  { %2134 = vmatmul.msk.f32.gmra.mxu2 %vm158_vm7, %v2304_v59 }
 0x4a0   :  { %2135 = vmatmul.msk.f32.gmra.mxu2 %vm158_vm7, %v2305_v50 }
 0x4a8   :  { %2136 = vmatmul.msk.f32.gmra.mxu2 %vm158_vm7, %v2306_v57 }
 0x4b0   :  { %2137 = vmatmul.msk.f32.gmra.mxu2 %vm158_vm7, %v2307_v40 }
 0x4b8   :  { %2138 = vmatmul.msk.f32.gmra.mxu2 %vm158_vm7, %v2308_v5 }
 0x4c0   :  { %2139 = vmatmul.msk.f32.gmra.mxu2 %vm158_vm7, %v2309_v6 }
 0x4c8   :  { %2140 = vmatmul.msk.f32.gmra.mxu2 %vm158_vm7, %v2310_v7 }
 0x4d0   :  { %2141 = vmatmul.msk.f32.gmra.mxu2 %vm158_vm7, %v2311_v30 }
 0x4d8   :  { %2142 = vmatmul.msk.f32.gmra.mxu2 %vm158_vm7, %v2313_v19 }
 0x4db   :  { %v2959_v9 = vpop.f32.mrf.mxu2 }
 0x4e0   :  { %2143 = vmatmul.msk.f32.gmra.mxu2 %vm158_vm7, %v2315_v21 }
 0x4e3   :  { %v2969_v33 = vpop.f32.mrf.mxu2 }
 0x4e8   :  { %2144 = vmatmul.msk.f32.gmra.mxu2 %vm158_vm7, %v2317_v27 }
 0x4eb   :  { %v2979_v26 = vpop.f32.mrf.mxu2 }
 0x4f0   :  { %2145 = vmatmul.msk.f32.gmra.mxu2 %vm158_vm7, %v2319_v38 }
 0x4f3   :  { %v2989_v10 = vpop.f32.mrf.mxu2 }
 0x4fb   :  { %v1228_v47 = vpop.f32.mrf.mxu2 }
 0x4fc   :  { %1372 = vxpose.xlu0.b32.start [1/4] (short) (narrow) %v1228_v47, 16 }
 0x503   :  { %v1231_v52 = vpop.f32.mrf.mxu2 }
 0x504   :  { %1373 = vxpose.xlu0.b32.cont [2/4] (short) (narrow) %v1231_v52, 16  ;;  %v3030_v52 = vpop.f32.mrf.mxu3 }
 0x50b   :  { %v1234_v22 = vpop.f32.mrf.mxu2 }
 0x50c   :  { %1374 = vxpose.xlu0.b32.cont [3/4] (short) (narrow) %v1234_v22, 16  ;;  %v3032_v20 = vpop.f32.mrf.mxu3 }
 0x513   :  { %v1237_v56 = vpop.f32.mrf.mxu2 }
 0x514   :  { %1375 = vxpose.xlu0.b32.end [4/4] (short) (narrow) %v1237_v56, 16  ;;  %v3034_v22 = vpop.f32.mrf.mxu3 }
 0x51b   :  { %v1240_v28 = vpop.f32.mrf.mxu2 }
 0x51c   :  { %1530 = vxpose.xlu2.b32.start [1/4] (short) (narrow) %v1240_v28, 16  ;;  %v3036_v32 = vpop.f32.mrf.mxu3 }
 0x523   :  { %v1243_v31 = vpop.f32.mrf.mxu2 }
 0x524   :  { %1531 = vxpose.xlu2.b32.cont [2/4] (short) (narrow) %v1243_v31, 16  ;;  %v1321_v56 = vpop.f32.mrf.mxu3 }
 0x52b   :  { %v1246_v34 = vpop.f32.mrf.mxu2 }
 0x52c   :  { %1532 = vxpose.xlu2.b32.cont [3/4] (short) (narrow) %v1246_v34, 16  ;;  %v3038_v28 = vpop.f32.mrf.mxu3 }
 0x533   :  { %v1249_v48 = vpop.f32.mrf.mxu2 }
 0x534   :  { %1533 = vxpose.xlu2.b32.end [4/4] (short) (narrow) %v1249_v48, 16  ;;  %v3040_v31 = vpop.f32.mrf.mxu3 }
 0x53b   :  { %v1252_v36 = vpop.f32.mrf.mxu2 }
 0x53c   :  { %1688 = vxpose.xlu0.b32.start [1/4] (short) (narrow) %v1252_v36, 16  ;;  %v3042_v48 = vpop.f32.mrf.mxu3 }
 0x543   :  { %v1255_v53 = vpop.f32.mrf.mxu2 }
 0x544   :  { %1689 = vxpose.xlu0.b32.cont [2/4] (short) (narrow) %v1255_v53, 16 }
 0x54b   :  { %v1258_v41 = vpop.f32.mrf.mxu2 }
 0x54c   :  { %1690 = vxpose.xlu0.b32.cont [3/4] (short) (narrow) %v1258_v41, 16 }
 0x553   :  { %v1261_v8 = vpop.f32.mrf.mxu2 }
 0x554   :  { %1691 = vxpose.xlu0.b32.end [4/4] (short) (narrow) %v1261_v8, 16 }
 0x55b   :  { %v1264_v39 = vpop.f32.mrf.mxu2 }
 0x55c   :  { %1846 = vxpose.xlu2.b32.start [1/4] (short) (narrow) %v1264_v39, 16 }
 0x563   :  { %v1267_v0 = vpop.f32.mrf.mxu2 }
 0x564   :  { %1847 = vxpose.xlu2.b32.cont [2/4] (short) (narrow) %v1267_v0, 16 }
 0x56b   :  { %v1270_v43 = vpop.f32.mrf.mxu2 }
 0x56c   :  { %1848 = vxpose.xlu2.b32.cont [3/4] (short) (narrow) %v1270_v43, 16 }
 0x573   :  { %v1273_v45 = vpop.f32.mrf.mxu2 }
 0x574   :  { %1849 = vxpose.xlu2.b32.end [4/4] (short) (narrow) %v1273_v45, 16 }
 0x5a0   :  { %v1388_v2 = vpop.trf.xlu0 }
 0x5a1   :  { %2178 = vmatmul.msk.f32.vlgmr.msrb.gmra.mxu1 %vm158_vm7, %v1388_v2 }
 0x5a8   :  { %v1389_v42 = vpop.trf.xlu0 }
 0x5a9   :  { %2179 = vmatmul.msk.f32.gmra.mxu1 %vm158_vm7, %v1389_v42 }
 0x5b5   :  { %v1546_v44 = vpop.trf.xlu2 }
 0x5b6   :  { %2186 = vmatmul.msk.f32.vlgmr.msra.gmra.mxu2 %vm158_vm7, %v1546_v44 }
 0x5bd   :  { %v1547_v37 = vpop.trf.xlu2 }
 0x5be   :  { %2187 = vmatmul.msk.f32.gmra.mxu2 %vm158_vm7, %v1547_v37  ;;  %v3044_v37 = vpop.f32.mrf.mxu3 }
 0x61e   :  { %v1427_v4 = vpop.f32.mrf.mxu1 }
 0x61f   :  { %v1433_v59 = vmul.f32 0.17677669, %v1427_v4 }
 0x621   :  { %v1435_v50 = vsel %vm88_vm0, %v1433_v59, -inf }
 0x626   :  { %v1430_v1 = vpop.f32.mrf.mxu1 }
 0x627   :  { %v1434_v49 = vmul.f32 0.17677669, %v1430_v1 }
 0x629   :  { %v1438_v62 = vsel %vm88_vm0, %v1434_v49, -inf }
 0x639   :  { %v1585_v14 = vpop.f32.mrf.mxu2 }
 0x63a   :  { %v1591_v25 = vmul.f32 0.17677669, %v1585_v14 }
 0x63c   :  { %v1593_v63 = vsel %vm88_vm0, %v1591_v25, -inf }
 0x641   :  { %v1588_v46 = vpop.f32.mrf.mxu2 }
 0x642   :  { %v1592_v54 = vmul.f32 0.17677669, %v1588_v46 }
 0x644   :  { %v1596_v3 = vsel %vm88_vm0, %v1592_v54, -inf }
 0x645   :  { %1597 = vmax.xlane.f32.xlu1 %v1596_v3 }
 0x64d   :  { %1594 = vmax.xlane.f32.xlu1 %v1593_v63 }
 0x655   :  { %1439 = vmax.xlane.f32.xlu1 %v1438_v62 }
 0x65d   :  { %1436 = vmax.xlane.f32.xlu1 %v1435_v50 }
 0x6b8   :  { %v1598_v57 = vpop.xlane.xlu1 %1597 }
 0x6b9   :  { %v1600_v40 = vsub.f32 %v1592_v54, %v1598_v57 }
 0x6bb   :  { %v1603_v5 = vmul.f32 1.442695, %v1600_v40 }
 0x6bd   :  { %2268 = vpow2.f32 %v1603_v5 }
 0x6c0   :  { %v1595_v6 = vpop.xlane.xlu1 %1594 }
 0x6c1   :  { %v1599_v7 = vsub.f32 %v1591_v25, %v1595_v6 }
 0x6c3   :  { %v2269_v30 = vpop.eup %2268  ;;  %v1601_v13 = vmul.f32 1.442695, %v1599_v7 }
 0x6c4   :  { %v1608_v17 = vsel %vm88_vm0, %v2269_v30, 0.0 }
 0x6c5   :  { %2270 = vpow2.f32 %v1601_v13  ;;  %1609 = vadd.xlane.f32.xlu1 %v1608_v17 }
 0x6c8   :  { %v1440_v19 = vpop.xlane.xlu1 %1439 }
 0x6c9   :  { %v1442_v15 = vsub.f32 %v1434_v49, %v1440_v19 }
 0x6cb   :  { %v3012_v51 = vpop.eup %2270  ;;  %v1445_v21 = vmul.f32 1.442695, %v1442_v15 }
 0x6cc   :  { %v1605_v24 = vsel %vm88_vm0, %v3012_v51, 0.0 }
 0x6cd   :  { %2272 = vpow2.f32 %v1445_v21  ;;  %1606 = vadd.xlane.f32.xlu1 %v1605_v24 }
 0x6d0   :  { %v1437_v23 = vpop.xlane.xlu1 %1436 }
 0x6d1   :  { %v1441_v27 = vsub.f32 %v1433_v59, %v1437_v23  ;;  %v1336_v59 = vpop.f32.mrf.mxu3 }
 0x6d3   :  { %v3016_v29 = vpop.eup %2272  ;;  %v1443_v35 = vmul.f32 1.442695, %v1441_v27 }
 0x6d4   :  { %v1450_v38 = vsel %vm88_vm0, %v3016_v29, 0.0 }
 0x6d5   :  { %2274 = vpow2.f32 %v1443_v35  ;;  %1451 = vadd.xlane.f32.xlu1 %v1450_v38 }
 0x6db   :  { %v3022_v12 = vpop.eup %2274 }
 0x6dc   :  { %v1447_v47 = vsel %vm88_vm0, %v3022_v12, 0.0 }
 0x6dd   :  { %1448 = vadd.xlane.f32.xlu1 %v1447_v47 }
 0x738   :  { %v1610_v34 = vpop.xlane.xlu1 %1609 }
 0x739   :  { %2276 = vrcp.f32 %v1610_v34  ;;  %v1637_v41 = vand.u32 2147483648, %v1610_v34  ;;  %v1635_v8 = vand.u32 2147483647, %v1610_v34  ;;  %vm1631_vm4 = vweird.f32 %v1610_v34 }
 0x73b   :  { %v1638_v43 = vor.u32 1.1754944e-38, %v1637_v41  ;;  %vm1636_vm6 = vcmp.eq.f32.partialorder %v1635_v8, 8.507059e+37 }
 0x73f   :  { %v2277_v36 = vpop.eup %2276 }
 0x740   :  { %v1627_v2 = vmul.f32 %v2277_v36, %v1610_v34  ;;  %v1607_v53 = vpop.xlane.xlu1 %1606  ;;  %vm1632_vm3 = vweird.f32 %v2277_v36 }
 0x741   :  { %2278 = vrcp.f32 %v1607_v53  ;;  %vm1633_vm5 = vmor %vm1631_vm4, %vm1632_vm3  ;;  %v1622_v1 = vand.u32 2147483648, %v1607_v53  ;;  %v1620_v63 = vand.u32 2147483647, %v1607_v53  ;;  %vm1616_vm9 = vweird.f32 %v1607_v53 }
 0x742   :  { %v1628_v42 = vsub.f32 1.0, %v1627_v2 }
 0x743   :  { %v1623_v50 = vor.u32 1.1754944e-38, %v1622_v1  ;;  %vm1621_vm11 = vcmp.eq.f32.partialorder %v1620_v63, 8.507059e+37 }
 0x744   :  { %v1629_v44 = vmul.f32 %v2277_v36, %v1628_v42 }
 0x746   :  { %v1630_v39 = vadd.f32 %v2277_v36, %v1629_v44 }
 0x747   :  { %v2279_v0 = vpop.eup %2278 }
 0x748   :  { %v1634_v45 = vsel %vm1633_vm5, %v2277_v36, %v1630_v39  ;;  %v1612_v14 = vmul.f32 %v2279_v0, %v1607_v53  ;;  %v1452_v46 = vpop.xlane.xlu1 %1451  ;;  %vm1617_vm8 = vweird.f32 %v2279_v0 }
 0x749   :  { %v1639_v4 = vsel %vm1636_vm6, %v1638_v43, %v1634_v45  ;;  %2280 = vrcp.f32 %v1452_v46  ;;  %vm1618_vm10 = vmor %vm1616_vm9, %vm1617_vm8  ;;  %v1477_v19 = vand.u32 2147483647, %v1452_v46  ;;  %vm1473_vm13 = vweird.f32 %v1452_v46 }
 0x74a   :  { %v1613_v54 = vsub.f32 1.0, %v1612_v14  ;;  %v1640_v3 = vmul.f32 %v2269_v30, %v1639_v4  ;;  %v1479_v30 = vand.u32 2147483648, %v1452_v46 }
 0x74b   :  { %vm1478_vm15 = vcmp.eq.f32.partialorder %v1477_v19, 8.507059e+37 }
 0x74c   :  { %v1614_v25 = vmul.f32 %v2279_v0, %v1613_v54  ;;  %2188 = vmatpush.xpose.msk.msrb.mxu2 %vm88_vm0, %v1640_v3  ;;  %v1480_v24 = vor.u32 1.1754944e-38, %v1479_v30 }
 0x74e   :  { %v1615_v49 = vadd.f32 %v2279_v0, %v1614_v25 }
 0x74f   :  { %v2281_v62 = vpop.eup %2280 }
 0x750   :  { %v1469_v57 = vmul.f32 %v2281_v62, %v1452_v46  ;;  %v1449_v40 = vpop.xlane.xlu1 %1448  ;;  %v1619_v5 = vsel %vm1618_vm10, %v2279_v0, %v1615_v49  ;;  %vm1474_vm12 = vweird.f32 %v2281_v62 }
 0x751   :  { %2282 = vrcp.f32 %v1449_v40  ;;  %v1624_v7 = vsel %vm1621_vm11, %v1623_v50, %v1619_v5  ;;  %vm1475_vm14 = vmor %vm1473_vm13, %vm1474_vm12  ;;  %v1464_v34 = vand.u32 2147483648, %v1449_v40  ;;  %vm1458_vm2 = vweird.f32 %v1449_v40 }
 0x752   :  { %v1470_v6 = vsub.f32 1.0, %v1469_v57  ;;  %v1625_v13 = vmul.f32 %v3012_v51, %v1624_v7  ;;  %v1339_v51 = vpop.f32.mrf.mxu3 }
 0x753   :  { %v1465_v53 = vor.u32 1.1754944e-38, %v1464_v34  ;;  %v26_v34 = vld [vmem:[%s3224_s4 + $0x10] sm:$0xff] }
 0x754   :  { %v1471_v17 = vmul.f32 %v2281_v62, %v1470_v6  ;;  %2189 = vmatpush.xpose.msk.msrb.mxu2 %vm88_vm0, %v1625_v13 }
 0x756   :  { %v1472_v15 = vadd.f32 %v2281_v62, %v1471_v17 }
 0x757   :  { %v2283_v21 = vpop.eup %2282  ;;  %2190 = vmatmul.msk.f32.vlgmr.msrb.gmra.mxu2 %vm88_vm0, %v1336_v59 }
 0x758   :  { %1896 = vmatpush.msra.mxu2 %v1321_v56  ;;  %v1476_v23 = vsel %vm1475_vm14, %v2281_v62, %v1472_v15  ;;  %v1454_v27 = vmul.f32 %v2283_v21, %v1449_v40  ;;  %vm1459_vm1 = vweird.f32 %v2283_v21  ;;  %v1462_v56 = vand.u32 2147483647, %v1449_v40 }
 0x759   :  { %v1481_v35 = vsel %vm1478_vm15, %v1480_v24, %v1476_v23  ;;  %vm1460_vm3 = vmor %vm1458_vm2, %vm1459_vm1 }
 0x75a   :  { %1897 = vmatpush.msra.mxu2 %v3036_v32  ;;  %v1455_v38 = vsub.f32 1.0, %v1454_v27  ;;  %v1482_v47 = vmul.f32 %v3016_v29, %v1481_v35  ;;  %vm1463_vm4 = vcmp.eq.f32.partialorder %v1462_v56, 8.507059e+37  ;;  %v1342_v41 = vpop.f32.mrf.mxu3 }
 0x75c   :  { %1898 = vmatpush.msra.mxu2 %v3034_v22  ;;  %v1456_v36 = vmul.f32 %v2283_v21, %v1455_v38  ;;  %2180 = vmatpush.xpose.msk.msra.mxu1 %vm88_vm0, %v1482_v47  ;;  %v24_v38 = vld [vmem:[%s3224_s4] sm:$0xff]  ;;  %v25_v47 = vld [vmem:[%s3224_s4 + $0x8] sm:$0xff] }
 0x75e   :  { %1899 = vmatpush.msra.mxu2 %v3032_v20  ;;  %v1457_v2 = vadd.f32 %v2283_v21, %v1456_v36  ;;  %v27_v36 = vld [vmem:[%s3224_s4 + $0x18] sm:$0xff] }
 0x75f   :  { %2191 = vmatmul.msk.f32.gmra.mxu2 %vm88_vm0, %v1339_v51 }
 0x760   :  { %v1461_v32 = vsel %vm1460_vm3, %v2283_v21, %v1457_v2 }
 0x761   :  { %v1466_v42 = vsel %vm1463_vm4, %v1465_v53, %v1461_v32 }
 0x762   :  { %v1467_v29 = vmul.f32 %v3022_v12, %v1466_v42  ;;  %v1345_v20 = vpop.f32.mrf.mxu3  ;;  %v1862_v12 = vpop.trf.xlu2 }
 0x764   :  { %2181 = vmatpush.xpose.msk.msra.mxu1 %vm88_vm0, %v1467_v29 }
 0x767   :  { %2182 = vmatmul.msk.f32.vlgmr.msra.gmra.mxu1 %vm88_vm0, %v3038_v28  ;;  %2192 = vmatmul.msk.f32.gmra.mxu2 %vm88_vm0, %v1342_v41 }
 0x768   :  { %1738 = vmatpush.msrb.mxu1 %v3030_v52 }
 0x76a   :  { %1739 = vmatpush.msrb.mxu1 %v3028_v18  ;;  %v1863_v52 = vpop.trf.xlu2  ;;  %v3121_v56 = vpop.f32.mrf.mxu3 }
 0x76c   :  { %1740 = vmatpush.msrb.mxu1 %v3026_v16  ;;  %v1704_v16 = vpop.trf.xlu0 }
 0x76e   :  { %1741 = vmatpush.msrb.mxu1 %v3020_v11 }
 0x76f   :  { %2183 = vmatmul.msk.f32.gmra.mxu1 %vm88_vm0, %v3040_v31  ;;  %2193 = vmatmul.msk.f32.gmra.mxu2 %vm88_vm0, %v1345_v20 }
 0x772   :  { %v3123_v2 = vpop.f32.mrf.mxu3 }
 0x774   :  { %v1705_v11 = vpop.trf.xlu0 }
 0x777   :  { %2184 = vmatmul.msk.f32.gmra.mxu1 %vm88_vm0, %v3042_v48  ;;  %2202 = vmatmul.msk.f32.vlgmr.msra.gmra.mxu2 %vm158_vm7, %v1862_v12 }
 0x77a   :  { %v3125_v32 = vpop.f32.mrf.mxu3 }
 0x77f   :  { %2185 = vmatmul.msk.f32.gmra.mxu1 %vm88_vm0, %v3044_v37  ;;  %2203 = vmatmul.msk.f32.gmra.mxu2 %vm158_vm7, %v1863_v52 }
 0x787   :  { %2194 = vmatmul.msk.f32.vlgmr.msrb.gmra.mxu1 %vm158_vm7, %v1704_v16 }
 0x78f   :  { %2195 = vmatmul.msk.f32.gmra.mxu1 %vm158_vm7, %v1705_v11  ;;  %v3127_v11 = vpop.f32.mrf.mxu3 }
 0x7da   :  { %v3076_v18 = vpop.f32.mrf.mxu2 }
 0x7e2   :  { %v3078_v22 = vpop.f32.mrf.mxu2 }
 0x7e4   :  { %v3080_v28 = vpop.f32.mrf.mxu1 }
 0x7ea   :  { %v3082_v31 = vpop.f32.mrf.mxu2 }
 0x7ec   :  { %v3084_v48 = vpop.f32.mrf.mxu1 }
 0x7f2   :  { %v3086_v44 = vpop.f32.mrf.mxu2 }
 0x7f4   :  { %v3088_v8 = vpop.f32.mrf.mxu1 }
 0x7fa   :  { %v1901_v37 = vpop.f32.mrf.mxu2 }
 0x7fb   :  { %v1907_v46 = vmul.f32 0.17677669, %v1901_v37 }
 0x7fc   :  { %v3090_v39 = vpop.f32.mrf.mxu1 }
 0x7fd   :  { %v1909_v54 = vsel %vm88_vm0, %v1907_v46, -inf }
 0x802   :  { %v1904_v0 = vpop.f32.mrf.mxu2 }
 0x803   :  { %v1908_v43 = vmul.f32 0.17677669, %v1904_v0 }
 0x804   :  { %v1743_v45 = vpop.f32.mrf.mxu1 }
 0x805   :  { %v1912_v14 = vsel %vm88_vm0, %v1908_v43, -inf  ;;  %v1749_v1 = vmul.f32 0.17677669, %v1743_v45 }
 0x806   :  { %1913 = vmax.xlane.f32.xlu1 %v1912_v14 }
 0x807   :  { %v1751_v63 = vsel %vm88_vm0, %v1749_v1, -inf }
 0x80c   :  { %v1746_v4 = vpop.f32.mrf.mxu1 }
 0x80d   :  { %v1750_v3 = vmul.f32 0.17677669, %v1746_v4 }
 0x80e   :  { %1910 = vmax.xlane.f32.xlu1 %v1909_v54 }
 0x80f   :  { %v1754_v25 = vsel %vm88_vm0, %v1750_v3, -inf }
 0x816   :  { %1755 = vmax.xlane.f32.xlu1 %v1754_v25 }
 0x81e   :  { %1752 = vmax.xlane.f32.xlu1 %v1751_v63 }
 0x879   :  { %v1914_v49 = vpop.xlane.xlu1 %1913 }
 0x87a   :  { %v1916_v62 = vsub.f32 %v1908_v43, %v1914_v49 }
 0x87c   :  { %v1919_v59 = vmul.f32 1.442695, %v1916_v62 }
 0x87e   :  { %2284 = vpow2.f32 %v1919_v59  ;;  %v1360_v59 = vpop.f32.mrf.mxu3 }
 0x881   :  { %v1911_v50 = vpop.xlane.xlu1 %1910 }
 0x882   :  { %v1915_v57 = vsub.f32 %v1907_v46, %v1911_v50 }
 0x884   :  { %v2285_v40 = vpop.eup %2284  ;;  %v1917_v5 = vmul.f32 1.442695, %v1915_v57 }
 0x885   :  { %v1924_v6 = vsel %vm88_vm0, %v2285_v40, 0.0 }
 0x886   :  { %2286 = vpow2.f32 %v1917_v5  ;;  %1925 = vadd.xlane.f32.xlu2 %v1924_v6 }
 0x889   :  { %v1756_v7 = vpop.xlane.xlu1 %1755 }
 0x88a   :  { %v1758_v30 = vsub.f32 %v1750_v3, %v1756_v7 }
 0x88c   :  { %v3097_v13 = vpop.eup %2286  ;;  %v1761_v17 = vmul.f32 1.442695, %v1758_v30 }
 0x88d   :  { %v1921_v19 = vsel %vm88_vm0, %v3097_v13, 0.0 }
 0x88e   :  { %2288 = vpow2.f32 %v1761_v17  ;;  %1922 = vadd.xlane.f32.xlu0 %v1921_v19 }
 0x891   :  { %v1753_v15 = vpop.xlane.xlu1 %1752 }
 0x892   :  { %v1757_v21 = vsub.f32 %v1749_v1, %v1753_v15 }
 0x894   :  { %v3101_v24 = vpop.eup %2288  ;;  %v1759_v23 = vmul.f32 1.442695, %v1757_v21 }
 0x895   :  { %v1766_v27 = vsel %vm88_vm0, %v3101_v24, 0.0 }
 0x896   :  { %2290 = vpow2.f32 %v1759_v23  ;;  %1767 = vadd.xlane.f32.xlu1 %v1766_v27 }
 0x89c   :  { %v3105_v35 = vpop.eup %2290 }
 0x89d   :  { %v1763_v51 = vsel %vm88_vm0, %v3105_v35, 0.0 }
 0x89e   :  { %1764 = vadd.xlane.f32.xlu1 %v1763_v51 }
 0x8b7   :  { %1098 = vperm.xlu1 %2227, %v24_v38  }
 0x8bf   :  { %1103 = vperm.xlu1 %2227, %v25_v47  }
 0x8c7   :  { %1108 = vperm.xlu1 %2227, %v26_v34   ;;  %v1363_v34 = vpop.f32.mrf.mxu3 }
 0x8cf   :  { %1113 = vperm.xlu1 %2227, %v27_v36  }
 0x8f9   :  { %v1926_v53 = vpop.xlane.xlu2 %1925 }
 0x8fa   :  { %2292 = vrcp.f32 %v1926_v53  ;;  %v1953_v12 = vand.u32 2147483648, %v1926_v53  ;;  %v1951_v16 = vand.u32 2147483647, %v1926_v53  ;;  %vm1947_vm5 = vweird.f32 %v1926_v53 }
 0x8fc   :  { %v1954_v43 = vor.u32 1.1754944e-38, %v1953_v12  ;;  %vm1952_vm8 = vcmp.eq.f32.partialorder %v1951_v16, 8.507059e+37 }
 0x900   :  { %v2293_v42 = vpop.eup %2292 }
 0x901   :  { %v1943_v29 = vmul.f32 %v2293_v42, %v1926_v53  ;;  %v1923_v41 = vpop.xlane.xlu0 %1922  ;;  %vm1948_vm7 = vweird.f32 %v2293_v42 }
 0x902   :  { %2294 = vrcp.f32 %v1923_v41  ;;  %vm1949_vm6 = vmor %vm1947_vm5, %vm1948_vm7  ;;  %v1938_v1 = vand.u32 2147483648, %v1923_v41  ;;  %v1936_v63 = vand.u32 2147483647, %v1923_v41  ;;  %vm1932_vm10 = vweird.f32 %v1923_v41 }
 0x903   :  { %v1944_v20 = vsub.f32 1.0, %v1943_v29 }
 0x904   :  { %v1939_v57 = vor.u32 1.1754944e-38, %v1938_v1  ;;  %vm1937_vm12 = vcmp.eq.f32.partialorder %v1936_v63, 8.507059e+37 }
 0x905   :  { %v1945_v52 = vmul.f32 %v2293_v42, %v1944_v20 }
 0x907   :  { %v1946_v37 = vadd.f32 %v2293_v42, %v1945_v52 }
 0x908   :  { %v2295_v0 = vpop.eup %2294 }
 0x909   :  { %v1950_v45 = vsel %vm1949_vm6, %v2293_v42, %v1946_v37  ;;  %v1928_v14 = vmul.f32 %v2295_v0, %v1923_v41  ;;  %v1768_v46 = vpop.xlane.xlu1 %1767  ;;  %vm1933_vm9 = vweird.f32 %v2295_v0  ;;  %v1366_v37 = vpop.f32.mrf.mxu3 }
 0x90a   :  { %v1955_v4 = vsel %vm1952_vm8, %v1954_v43, %v1950_v45  ;;  %2296 = vrcp.f32 %v1768_v46  ;;  %vm1934_vm11 = vmor %vm1932_vm10, %vm1933_vm9  ;;  %v1795_v30 = vand.u32 2147483648, %v1768_v46  ;;  %v1793_v15 = vand.u32 2147483647, %v1768_v46  ;;  %v2322_v43 = vld [vmem:[%s3221_s0] sm:$0xff] }
 0x90b   :  { %v1956_v54 = vmul.f32 %v2285_v40, %v1955_v4  ;;  %v1929_v3 = vsub.f32 1.0, %v1928_v14  ;;  %vm1789_vm14 = vweird.f32 %v1768_v46 }
 0x90c   :  { %v1796_v27 = vor.u32 1.1754944e-38, %v1795_v30  ;;  %vm1794_vm1 = vcmp.eq.f32.partialorder %v1793_v15, 8.507059e+37 }
 0x90d   :  { %v1930_v25 = vmul.f32 %v2295_v0, %v1929_v3  ;;  %2204 = vmatpush.xpose.msk.msrb.mxu2 %vm88_vm0, %v1956_v54 }
 0x90f   :  { %v1931_v49 = vadd.f32 %v2295_v0, %v1930_v25 }
 0x910   :  { %v2297_v62 = vpop.eup %2296 }
 0x911   :  { %v1935_v50 = vsel %vm1934_vm11, %v2295_v0, %v1931_v49  ;;  %v1785_v5 = vmul.f32 %v2297_v62, %v1768_v46  ;;  %v1765_v6 = vpop.xlane.xlu1 %1764  ;;  %vm1790_vm13 = vweird.f32 %v2297_v62 }
 0x912   :  { %2298 = vrcp.f32 %v1765_v6  ;;  %v1940_v40 = vsel %vm1937_vm12, %v1939_v57, %v1935_v50  ;;  %vm1791_vm15 = vmor %vm1789_vm14, %vm1790_vm13  ;;  %v1780_v53 = vand.u32 2147483648, %v1765_v6  ;;  %v1778_v29 = vand.u32 2147483647, %v1765_v6 }
 0x913   :  { %v1786_v7 = vsub.f32 1.0, %v1785_v5  ;;  %v1941_v17 = vmul.f32 %v3097_v13, %v1940_v40  ;;  %vm1774_vm3 = vweird.f32 %v1765_v6 }
 0x914   :  { %v1781_v20 = vor.u32 1.1754944e-38, %v1780_v53  ;;  %vm1779_vm7 = vcmp.eq.f32.partialorder %v1778_v29, 8.507059e+37 }
 0x915   :  { %v1787_v19 = vmul.f32 %v2297_v62, %v1786_v7  ;;  %2205 = vmatpush.xpose.msk.msrb.mxu2 %vm88_vm0, %v1941_v17 }
 0x917   :  { %v1788_v21 = vadd.f32 %v2297_v62, %v1787_v19 }
 0x918   :  { %v2299_v23 = vpop.eup %2298  ;;  %2206 = vmatmul.msk.f32.vlgmr.msrb.gmra.mxu2 %vm88_vm0, %v1360_v59 }
 0x919   :  { %v1792_v51 = vsel %vm1791_vm15, %v2297_v62, %v1788_v21  ;;  %v1770_v38 = vmul.f32 %v2299_v23, %v1765_v6  ;;  %vm1775_vm2 = vweird.f32 %v2299_v23  ;;  %v2329_v6 = vld [vmem:[%s3221_s0 + $0x38] sm:$0xff] }
 0x91a   :  { %v1797_v47 = vsel %vm1794_vm1, %v1796_v27, %v1792_v51  ;;  %vm1776_vm4 = vmor %vm1774_vm3, %vm1775_vm2 }
 0x91b   :  { %v1771_v36 = vsub.f32 1.0, %v1770_v38  ;;  %v1798_v13 = vmul.f32 %v3101_v24, %v1797_v47 }
 0x91d   :  { %v1772_v42 = vmul.f32 %v2299_v23, %v1771_v36  ;;  %2196 = vmatpush.xpose.msk.msra.mxu1 %vm88_vm0, %v1798_v13 }
 0x91f   :  { %v1773_v41 = vadd.f32 %v2299_v23, %v1772_v42 }
 0x920   :  { %2207 = vmatmul.msk.f32.gmra.mxu2 %vm88_vm0, %v1363_v34 }
 0x921   :  { %v1777_v12 = vsel %vm1776_vm4, %v2299_v23, %v1773_v41 }
 0x922   :  { %v1782_v52 = vsel %vm1779_vm7, %v1781_v20, %v1777_v12 }
 0x923   :  { %v1783_v16 = vmul.f32 %v3105_v35, %v1782_v52  ;;  %v1369_v35 = vpop.f32.mrf.mxu3 }
 0x925   :  { %2197 = vmatpush.xpose.msk.msra.mxu1 %vm88_vm0, %v1783_v16 }
 0x928   :  { %2198 = vmatmul.msk.f32.vlgmr.msra.gmra.mxu1 %vm88_vm0, %v3121_v56  ;;  %2208 = vmatmul.msk.f32.gmra.mxu2 %vm88_vm0, %v1366_v37 }
 0x929   :  { %v1099_v24 = vpop.permute.xlu1 %1098 }
 0x92a   :  { %v1134_v0 = vadd.f32 %v2959_v9, %v1099_v24  ;;  %v2323_v9 = vld [vmem:[%s3221_s0 + $0x8] sm:$0xff] }
 0x92c   :  { %v1145_v45 = vadd.f32 %v2322_v43, %v1134_v0 }
 0x92e   :  { %1149 = vst.msk [vmem:[%s3225_s5] sm:$0xff] %vm88_vm0, %v1145_v45 }
 0x930   :  { %2199 = vmatmul.msk.f32.gmra.mxu1 %vm88_vm0, %v3123_v2  ;;  %2209 = vmatmul.msk.f32.gmra.mxu2 %vm88_vm0, %v1369_v35 }
 0x931   :  { %v1104_v56 = vpop.permute.xlu1 %1103 }
 0x932   :  { %v1137_v14 = vadd.f32 %v2969_v33, %v1104_v56  ;;  %v2324_v33 = vld [vmem:[%s3221_s0 + $0x10] sm:$0xff] }
 0x934   :  { %v1146_v46 = vadd.f32 %v2323_v9, %v1137_v14 }
 0x936   :  { %1150 = vst.msk [vmem:[%s3225_s5 + $0x8] sm:$0xff] %vm88_vm0, %v1146_v46 }
 0x938   :  { %2200 = vmatmul.msk.f32.gmra.mxu1 %vm88_vm0, %v3125_v32 }
 0x939   :  { %v1109_v4 = vpop.permute.xlu1 %1108 }
 0x93a   :  { %v1140_v2 = vadd.f32 %v2979_v26, %v1109_v4  ;;  %v2325_v26 = vld [vmem:[%s3221_s0 + $0x18] sm:$0xff] }
 0x93c   :  { %v1147_v54 = vadd.f32 %v2324_v33, %v1140_v2 }
 0x93e   :  { %1151 = vst.msk [vmem:[%s3225_s5 + $0x10] sm:$0xff] %vm88_vm0, %v1147_v54 }
 0x940   :  { %2201 = vmatmul.msk.f32.gmra.mxu1 %vm88_vm0, %v3127_v11 }
 0x941   :  { %v1114_v3 = vpop.permute.xlu1 %1113 }
 0x942   :  { %v1143_v25 = vadd.f32 %v2989_v10, %v1114_v3 }
 0x944   :  { %v1148_v32 = vadd.f32 %v2325_v26, %v1143_v25 }
 0x946   :  { %1152 = vst.msk [vmem:[%s3225_s5 + $0x18] sm:$0xff] %vm88_vm0, %v1148_v32 }
 0x99b   :  { %v1992_v1 = vpop.f32.mrf.mxu2 }
 0x9a3   :  { %v1995_v63 = vpop.f32.mrf.mxu2 }
 0x9a5   :  { %v1834_v49 = vpop.f32.mrf.mxu1 }
 0x9ab   :  { %v1998_v62 = vpop.f32.mrf.mxu2 }
 0x9ad   :  { %v1837_v59 = vpop.f32.mrf.mxu1 }
 0x9b3   :  { %v2001_v50 = vpop.f32.mrf.mxu2 }
 0x9b4   :  { %2004 = vmatpush.msrb.mxu1 %v2001_v50 }
 0x9b5   :  { %v1840_v11 = vpop.f32.mrf.mxu1 }
 0x9b6   :  { %2005 = vmatpush.msrb.mxu1 %v1998_v62 }
 0x9b8   :  { %2006 = vmatpush.msrb.mxu1 %v1995_v63 }
 0x9ba   :  { %2007 = vmatpush.msrb.mxu1 %v1992_v1 }
 0x9bd   :  { %v1843_v10 = vpop.f32.mrf.mxu1 }
 0x9be   :  { %2008 = vmatpush.msrb.mxu1 %v1843_v10 }
 0x9c0   :  { %2009 = vmatpush.msrb.mxu1 %v1840_v11 }
 0x9c2   :  { %2010 = vmatpush.msrb.mxu1 %v1837_v59 }
 0x9c4   :  { %2011 = vmatpush.msrb.mxu1 %v1834_v49 }
 0x9c6   :  { %2012 = vmatpush.msrb.mxu1 %v3086_v44 }
 0x9c8   :  { %2013 = vmatpush.msrb.mxu1 %v3082_v31 }
 0x9ca   :  { %2014 = vmatpush.msrb.mxu1 %v3078_v22 }
 0x9cc   :  { %2015 = vmatpush.msrb.mxu1 %v3076_v18  ;;  %v2326_v18 = vld [vmem:[%s3221_s0 + $0x20] sm:$0xff] }
 0x9ce   :  { %2016 = vmatpush.msrb.mxu1 %v3090_v39 }
 0x9d0   :  { %2017 = vmatpush.msrb.mxu1 %v3088_v8  ;;  %v2328_v8 = vld [vmem:[%s3221_s0 + $0x30] sm:$0xff] }
 0x9d2   :  { %2018 = vmatpush.msrb.mxu1 %v3084_v48 }
 0x9d4   :  { %2019 = vmatpush.msrb.mxu1 %v3080_v28 }
 0x9d5   :  { %2020 = vmatmul.f32.vlgmr.msrb.gmra.mxu1 %v2878_v58 }
 0x9dd   :  { %2023 = vmatmul.f32.gmra.mxu1 %v2887_v55  ;;  %v2327_v55 = vld [vmem:[%s3221_s0 + $0x28] sm:$0xff] }
 0x9e5   :  { %2026 = vmatmul.f32.gmra.mxu1 %v2894_v60 }
 0x9ed   :  { %2029 = vmatmul.f32.gmra.mxu1 %v2900_v61 }
 0xa52   :  { %v2021_v31 = vpop.f32.mrf.mxu1 }
 0xa53   :  { %v2022_v22 = vadd.f32 %v2021_v31, %v1099_v24 }
 0xa55   :  { %v2033_v44 = vadd.f32 %v2326_v18, %v2022_v22 }
 0xa57   :  { %2210 = vst.msk [vmem:[%s3225_s5 + $0x20] sm:$0xff] %vm88_vm0, %v2033_v44 }
 0xa5a   :  { %v2024_v28 = vpop.f32.mrf.mxu1 }
 0xa5b   :  { %v2025_v58 = vadd.f32 %v2024_v28, %v1104_v56 }
 0xa5d   :  { %v2034_v60 = vadd.f32 %v2327_v55, %v2025_v58 }
 0xa5f   :  { %2211 = vst.msk [vmem:[%s3225_s5 + $0x28] sm:$0xff] %vm88_vm0, %v2034_v60 }
 0xa62   :  { %v2027_v61 = vpop.f32.mrf.mxu1 }
 0xa63   :  { %v2028_v48 = vadd.f32 %v2027_v61, %v1109_v4 }
 0xa65   :  { %v2035_v39 = vadd.f32 %v2328_v8, %v2028_v48 }
 0xa67   :  { %2212 = vst.msk [vmem:[%s3225_s5 + $0x30] sm:$0xff] %vm88_vm0, %v2035_v39 }
 0xa6a   :  { %v2030_v57 = vpop.f32.mrf.mxu1 }
 0xa6b   :  { %v2031_v5 = vadd.f32 %v2030_v57, %v1114_v3 }
 0xa6d   :  { %v2036_v7 = vadd.f32 %v2329_v6, %v2031_v5 }
 0xa6f   :  { %2213 = vst.msk [vmem:[%s3225_s5 + $0x38] sm:$0xff] %vm88_vm0, %v2036_v7 }

</bundles_post_ra>
